<compile_context>
chip_gen: v7x
topology: tpu7x:2x2x1
jax: 0.10.0
libtpu: 0.0.40
codegen_flags: <defaults>
</compile_context>

<pallas_src>
import functools
import math

import numpy as np
import jax
import jax.numpy as jnp
from jax.experimental import pallas as pl
from jax.experimental.pallas import tpu as pltpu


def _resample_kernel(x_ref, w_ref, o_ref, *, col_splits):
    # x_ref: (TILE_ROWS, K_IN)  one row = the input window of one output period
    # w_ref: (K_IN, OUT_R)      periodic interpolation band (resident in VMEM)
    # o_ref: (TILE_ROWS, OUT_R) one row = one period of resampled output
    for c0, c1, r0, r1 in col_splits:          # static band-split (Python ints)
        o_ref[:, c0:c1] = jnp.dot(
            x_ref[:, r0:r1],
            w_ref[r0:r1, c0:c1],
            preferred_element_type=jnp.float32,
            precision=jax.lax.Precision.HIGHEST,
        )


def change_sample_rate(wav: jax.Array, input_rate: int, output_rate: int,
                       *, max_tile_rows: int = 512) -> jax.Array:
    """Pallas equivalent of ChangeSampleRate.forward (wav.view(B, -1) semantics)."""
    B = wav.shape[0]
    wav2d = jnp.reshape(wav, (B, -1)).astype(jnp.float32)     # wav.view(B, -1)
    L = wav2d.shape[1]
    N = (L * output_rate) // input_rate
    if N <= 0:
        return jnp.zeros((B, 0), jnp.float32)

    # ---- exact integer index math (host side, arbitrary length safe) ----
    g = math.gcd(input_rate, output_rate)
    in_r, out_r = input_rate // g, output_rate // g
    extra = 1 if out_r > in_r else 0          # upsampling: 1 overlap sample/period
    k_in = in_r + extra

    r = np.arange(out_r)
    tab = (r * in_r) // out_r                                   # lo within period
    frac = ((r * in_r) % out_r).astype(np.float32) / np.float32(out_r)
    hi = np.minimum(tab + 1, k_in - 1)                          # inert unless ratio==1
    w_band = np.zeros((k_in, out_r), np.float32)
    w_band[tab, r] += (1.0 - frac)
    w_band[hi, r] += frac
    w_band = jnp.asarray(w_band)

    # ---- row tiling: one row per output period, a few hundred rows per tile ----
    q_out = -(-N // out_r)                                      # periods needed
    rows_min = B * q_out
    n_tiles = max(1, -(-rows_min // max_tile_rows))
    tile_rows = max(8, -(-(-(-rows_min // n_tiles)) // 8) * 8)  # mult of 8, <=512
    q_mult = tile_rows // math.gcd(B, tile_rows)
    Q = -(-q_out // q_mult) * q_mult                            # periods per batch row
    rows = B * Q                                                # multiple of tile_rows

    # ---- build (rows, k_in) period-window slab (edge pad == .clamp(max=L-1)) ----
    p_len = Q * in_r + extra
    if p_len <= L:
        wav_p = wav2d[:, :p_len]
    else:
        wav_p = jnp.pad(wav2d, ((0, 0), (0, p_len - L)), mode="edge")
    x = jnp.reshape(wav_p[:, : Q * in_r], (rows, in_r))         # free row-major reshape
    if extra:
        nxt = wav_p[:, in_r: Q * in_r + 1: in_r]                # next-period head
        x = jnp.concatenate([x, jnp.reshape(nxt, (rows, 1))], axis=1)

    # ---- band-split W columns so each dot uses only the ~128 rows it needs ----
    n_chunks = max(1, min(out_r, -(-in_r // 128)))
    bounds = [(s * out_r) // n_chunks for s in range(n_chunks + 1)]
    col_splits = []
    for s in range(n_chunks):
        c0, c1 = bounds[s], bounds[s + 1]
        if c1 <= c0:
            continue
        r0 = int(tab[c0])
        r1 = min(int(tab[c1 - 1]) + 2, k_in)
        col_splits.append((c0, c1, r0, r1))
    col_splits = tuple(col_splits)

    kernel = functools.partial(_resample_kernel, col_splits=col_splits)
    out = pl.pallas_call(
        kernel,
        out_shape=jax.ShapeDtypeStruct((rows, out_r), jnp.float32),
        grid=(rows // tile_rows,),
        in_specs=[
            pl.BlockSpec((tile_rows, k_in), lambda i: (i, 0)),   # pipelined input tiles
            pl.BlockSpec((k_in, out_r), lambda i: (0, 0)),       # resident band matrix
        ],
        out_specs=pl.BlockSpec((tile_rows, out_r), lambda i: (i, 0)),
        compiler_params=pltpu.CompilerParams(
            dimension_semantics=("parallel",)),                  # megacore on v7x
    )(x, w_band)

    return jnp.reshape(out, (B, Q * out_r))[:, :N]


def _reference(wav, input_rate, output_rate):
    # Pure-JAX reference mirroring the PyTorch module (exact integer indexing).
    B = wav.shape[0]
    w = jnp.reshape(wav, (B, -1)).astype(jnp.float32)
    L = w.shape[1]
    N = (L * output_rate) // input_rate
    n = jnp.arange(N)
    num = n * input_rate
    lo = num // output_rate
    hi = jnp.minimum(lo + 1, L - 1)
    frac = (num % output_rate).astype(jnp.float32) / jnp.float32(output_rate)
    return w[:, lo] * (1.0 - frac)[None, :] + w[:, hi] * frac[None, :]


def _check(wav, input_rate, output_rate):
    out = jax.block_until_ready(change_sample_rate(wav, input_rate, output_rate))
    ref = _reference(wav, input_rate, output_rate)
    assert out.shape == ref.shape, (out.shape, ref.shape)
    err = float(jnp.max(jnp.abs(out - ref)))
    # tolerance leaves headroom for multi-pass f32 MXU rounding
    assert err < 1e-3, f"mismatch vs reference: max abs err = {err}"


if __name__ == "__main__":
    key = jax.random.PRNGKey(0)
    input_rate, output_rate = 22050, 16000

    # Small shape consistent with the module's forward (batch, channels, time).
    wav_small = jax.random.normal(key, (2, 1, 128), dtype=jnp.float32)
    _check(wav_small, input_rate, output_rate)

    # Larger clip to exercise the multi-tile, pipelined (grid > 1) path.
    wav_long = jax.random.normal(jax.random.PRNGKey(0), (2, 1, 120000),
                                 dtype=jnp.float32)
    _check(wav_long, input_rate, output_rate)

    print("KERNEL_OK")
</pallas_src>

<mosaic_0001>
module attributes {stable_mosaic.version = 11 : i64} {
  func.func @_resample_kernel(%arg0: i32, %arg1: memref<8x441xf32, #tpu.memory_space<vmem>>, %arg2: memref<441x320xf32, #tpu.memory_space<vmem>>, %arg3: memref<8x320xf32, #tpu.memory_space<vmem>>) attributes {dimension_semantics = [#tpu.dimension_semantics<parallel>], iteration_bounds = array<i64: 1>, scalar_prefetch = 0 : i64, scratch_operands = 0 : i64, tpu.core_type = #tpu.core_type<tc>, window_params = [{transform_indices = @transform_0, window_bounds = array<i64: 8, 441>}, {pipeline_mode = #tpu.pipeline_mode<synchronous>, transform_indices = @transform_1, window_bounds = array<i64: 441, 320>}, {transform_indices = @transform_2, window_bounds = array<i64: 8, 320>}]} {
    %c0 = arith.constant 0 : index
    %c0_0 = arith.constant 0 : index
    %0 = vector.load %arg1[%c0, %c0_0] : memref<8x441xf32, #tpu.memory_space<vmem>>, vector<8x110xf32>
    %c0_1 = arith.constant 0 : index
    %c0_2 = arith.constant 0 : index
    %1 = vector.load %arg2[%c0_1, %c0_2] : memref<441x320xf32, #tpu.memory_space<vmem>>, vector<110x80xf32>
    %cst = arith.constant dense<0.000000e+00> : vector<8x80xf32>
    %2 = tpu.matmul %0, %1, %cst {dimension_numbers = #tpu.dot_dimension_numbers<[1], [0], [0], [1], [0, 0, 1, 1], [], []>, precision = #tpu.contract_precision<fp32>} : vector<8x110xf32>, vector<110x80xf32>, vector<8x80xf32> -> vector<8x80xf32>
    %c0_3 = arith.constant 0 : index
    %c0_4 = arith.constant 0 : index
    %3 = vector.load %arg3[%c0_3, %c0_4] : memref<8x320xf32, #tpu.memory_space<vmem>>, vector<8x80xf32>
    tpu.vector_store %arg3[%c0_3, %c0_4], %2 {strides = array<i32>} : memref<8x320xf32, #tpu.memory_space<vmem>>, vector<8x80xf32>,
    %c0_5 = arith.constant 0 : index
    %c110 = arith.constant 110 : index
    %4 = vector.load %arg1[%c0_5, %c110] : memref<8x441xf32, #tpu.memory_space<vmem>>, vector<8x111xf32>
    %c110_6 = arith.constant 110 : index
    %c80 = arith.constant 80 : index
    %5 = vector.load %arg2[%c110_6, %c80] : memref<441x320xf32, #tpu.memory_space<vmem>>, vector<111x80xf32>
    %cst_7 = arith.constant dense<0.000000e+00> : vector<8x80xf32>
    %6 = tpu.matmul %4, %5, %cst_7 {dimension_numbers = #tpu.dot_dimension_numbers<[1], [0], [0], [1], [0, 0, 1, 1], [], []>, precision = #tpu.contract_precision<fp32>} : vector<8x111xf32>, vector<111x80xf32>, vector<8x80xf32> -> vector<8x80xf32>
    %c0_8 = arith.constant 0 : index
    %c80_9 = arith.constant 80 : index
    %7 = vector.load %arg3[%c0_8, %c80_9] : memref<8x320xf32, #tpu.memory_space<vmem>>, vector<8x80xf32>
    tpu.vector_store %arg3[%c0_8, %c80_9], %6 {strides = array<i32>} : memref<8x320xf32, #tpu.memory_space<vmem>>, vector<8x80xf32>,
    %c0_10 = arith.constant 0 : index
    %c220 = arith.constant 220 : index
    %8 = vector.load %arg1[%c0_10, %c220] : memref<8x441xf32, #tpu.memory_space<vmem>>, vector<8x111xf32>
    %c220_11 = arith.constant 220 : index
    %c160 = arith.constant 160 : index
    %9 = vector.load %arg2[%c220_11, %c160] : memref<441x320xf32, #tpu.memory_space<vmem>>, vector<111x80xf32>
    %cst_12 = arith.constant dense<0.000000e+00> : vector<8x80xf32>
    %10 = tpu.matmul %8, %9, %cst_12 {dimension_numbers = #tpu.dot_dimension_numbers<[1], [0], [0], [1], [0, 0, 1, 1], [], []>, precision = #tpu.contract_precision<fp32>} : vector<8x111xf32>, vector<111x80xf32>, vector<8x80xf32> -> vector<8x80xf32>
    %c0_13 = arith.constant 0 : index
    %c160_14 = arith.constant 160 : index
    %11 = vector.load %arg3[%c0_13, %c160_14] : memref<8x320xf32, #tpu.memory_space<vmem>>, vector<8x80xf32>
    tpu.vector_store %arg3[%c0_13, %c160_14], %10 {strides = array<i32>} : memref<8x320xf32, #tpu.memory_space<vmem>>, vector<8x80xf32>,
    %c0_15 = arith.constant 0 : index
    %c330 = arith.constant 330 : index
    %12 = vector.load %arg1[%c0_15, %c330] : memref<8x441xf32, #tpu.memory_space<vmem>>, vector<8x111xf32>
    %c330_16 = arith.constant 330 : index
    %c240 = arith.constant 240 : index
    %13 = vector.load %arg2[%c330_16, %c240] : memref<441x320xf32, #tpu.memory_space<vmem>>, vector<111x80xf32>
    %cst_17 = arith.constant dense<0.000000e+00> : vector<8x80xf32>
    %14 = tpu.matmul %12, %13, %cst_17 {dimension_numbers = #tpu.dot_dimension_numbers<[1], [0], [0], [1], [0, 0, 1, 1], [], []>, precision = #tpu.contract_precision<fp32>} : vector<8x111xf32>, vector<111x80xf32>, vector<8x80xf32> -> vector<8x80xf32>
    %c0_18 = arith.constant 0 : index
    %c240_19 = arith.constant 240 : index
    %15 = vector.load %arg3[%c0_18, %c240_19] : memref<8x320xf32, #tpu.memory_space<vmem>>, vector<8x80xf32>
    tpu.vector_store %arg3[%c0_18, %c240_19], %14 {strides = array<i32>} : memref<8x320xf32, #tpu.memory_space<vmem>>, vector<8x80xf32>,
    return
  }
  func.func @transform_0(%arg0: i32) -> (i32, i32) {
    %c0_i32 = arith.constant 0 : i32
    %c0_i32_0 = arith.constant 0 : i32
    return %arg0, %c0_i32 : i32, i32
  }
  func.func @transform_1(%arg0: i32) -> (i32, i32) {
    %c0_i32 = arith.constant 0 : i32
    %c0_i32_0 = arith.constant 0 : i32
    %c0_i32_1 = arith.constant 0 : i32
    return %c0_i32, %c0_i32_0 : i32, i32
  }
  func.func @transform_2(%arg0: i32) -> (i32, i32) {
    %c0_i32 = arith.constant 0 : i32
    %c0_i32_0 = arith.constant 0 : i32
    return %arg0, %c0_i32 : i32, i32
  }
}

</mosaic_0001>

<bundles_post_ra>
// kernel: tpu_custom_call.1
= control target key start
LH: loop header
LB: loop body
LE: loop exit
PB: predicated region body
PF: predicated region fallthrough
CT: control target
= control target key end

     0   :  { %vm722_vm0 = vcmask 1041408   ;;  %s4768_s29 = smov 48   ;;  %v6427_v24 = vmov 0.0|0.0   ;;  %vm31_vm1 = vcmask 1045504   ;;  %vm4770_vm2 = vmmov 0   ;;  %s6418_s0 = inlined_call_operand.vmem [shape: f32[8,441], index: 0, kind: input, shape index: {}]   ;;  %s6419_s1 = inlined_call_operand.vmem [shape: f32[441,320], index: 1, kind: input, shape index: {}]   ;;  %s6420_s2 = inlined_call_operand.hbm [shape: f32[8,320], index: 2, kind: output, shape index: {}]  }
   0x1   :  { %v656_v0 = vld [vmem:[%s6419_s1 + $0x150] sm:$0xff]  ;;  %v658_v1 = vld [vmem:[%s6419_s1 + $0x168] sm:$0xff]  ;;  %v654_v2 = vld [vmem:[%s6419_s1 + $0x138] sm:$0xc0]  ;;  %4187 = vmatprep.subr.bf16.mxu0 %v6427_v24  ;;  %4313 = vmatprep.subr.bf16.mxu1 %v6427_v24  ;;  %vm27_vm3 = vcmask 900096  }
   0x2   :  { %v724_v3 = vrot.slane %v656_v0, 6  ;;  %v729_v4 = vrot.slane %v658_v1, 6  ;;  %v723_v5 = vrot.slane %v654_v2, 6  ;;  %v657_v6 = vld [vmem:[%s6419_s1 + $0x158] sm:$0xff]  ;;  %v659_v7 = vld [vmem:[%s6419_s1 + $0x170] sm:$0xff]  ;;  %v661_v8 = vld [vmem:[%s6419_s1 + $0x188] sm:$0xff] }
   0x3   :  { %v727_v9 = vrot.slane %v657_v6, 6  ;;  %v731_v10 = vrot.slane %v659_v7, 6  ;;  %v655_v11 = vld [vmem:[%s6419_s1 + $0x140] sm:$0xc0]  ;;  %v4828_v17 = vld [vmem:[%s6419_s1 + $0x18] sm:$0xff]  ;;  %v735_v18 = vrot.slane %v661_v8, 6 }
   0x4   :  { %v660_v12 = vld [vmem:[%s6419_s1 + $0x180] sm:$0xff]  ;;  %v730_v13 = vsel %vm722_vm0, %v724_v3, %v729_v4  ;;  %v725_v14 = vsel %vm722_vm0, %v723_v5, %v724_v3  ;;  %v726_v15 = vrot.slane %v655_v11, 6  ;;  %v15_v21 = vld [vmem:[%s6419_s1 + $0x30] sm:$0xff]  ;;  %v39_v25 = vand.u32 4294901760, %v4828_v17  ;;  %v4845_v27 = vld [vmem:[%s6419_s1 + $0x48] sm:$0xff] }
   0x5   :  { %v13_v16 = vld [vmem:[%s6419_s1] sm:$0xff]  ;;  %785 = vrot.lane.b32.xlu1 %v730_v13, %s4768_s29  ;;  %781 = vrot.lane.b32.xlu0 %v725_v14, %s4768_s29  ;;  %v733_v19 = vrot.slane %v660_v12, 6  ;;  %v732_v22 = vsel %vm722_vm0, %v727_v9, %v731_v10  ;;  %v662_v28 = vld [vmem:[%s6419_s1 + $0x198] sm:$0xff]  ;;  %v42_v29 = vand.u32 4294901760, %v15_v21  ;;  %v45_v30 = vand.u32 4294901760, %v4845_v27 }
   0x6   :  { %v36_v20 = vand.u32 4294901760, %v13_v16  ;;  %v728_v23 = vsel %vm722_vm0, %v726_v15, %v727_v9  ;;  %v663_v26 = vld [vmem:[%s6419_s1 + $0x1a0] sm:$0xff]  ;;  %v4860_v32 = vld [vmem:[%s6419_s1 + $0x78] sm:$0xff]  ;;  %v736_v34 = vsel %vm722_vm0, %v731_v10, %v735_v18  ;;  %v737_v37 = vrot.slane %v662_v28, 6  ;;  %v664_v40 = vld [vmem:[%s6419_s1 + $0x1b0] sm:$0xff] }
   0x7   :  { %v4855_v31 = vld [vmem:[%s6419_s1 + $0x60] sm:$0xff]  ;;  %v734_v35 = vsel %vm722_vm0, %v729_v4, %v733_v19  ;;  %v739_v36 = vrot.slane %v663_v26, 6  ;;  %v4871_v38 = vpack.c.bf16 %v45_v30, %v42_v29  ;;  %v665_v39 = vld [vmem:[%s6419_s1 + $0x1b8] sm:$0xff]  ;;  %v51_v42 = vand.u32 4294901760, %v4860_v32  ;;  %v4885_v43 = vld [vmem:[%s6419_s1 + $0x90] sm:$0xff] }
   0x8   :  { %v4862_v33 = vpack.c.bf16 %v39_v25, %v36_v20  ;;  %v48_v41 = vand.u32 4294901760, %v4855_v31  ;;  %v4890_v44 = vld [vmem:[%s6419_s1 + $0xa8] sm:$0xff]  ;;  %v743_v46 = vrot.slane %v665_v39, 6  ;;  %v741_v47 = vrot.slane %v664_v40, 6  ;;  %v667_v48 = vld [vmem:[%s6419_s1 + $0x1d0] sm:$0xff]  ;;  %v4915_v54 = vld [vmem:[%s6419_s1 + $0xc0] sm:$0xff] }
   0x9   :  { %787 = vrot.lane.b32.xlu1 %v732_v22, %s4768_s29  ;;  %783 = vrot.lane.b32.xlu0 %v728_v23, %s4768_s29  ;;  %v740_v45 = vsel %vm722_vm0, %v735_v18, %v739_v36  ;;  %v738_v49 = vsel %vm722_vm0, %v733_v19, %v737_v37  ;;  %v54_v51 = vand.u32 4294901760, %v4885_v43  ;;  %v57_v52 = vand.u32 4294901760, %v4890_v44  ;;  %v666_v53 = vld [vmem:[%s6419_s1 + $0x1c8] sm:$0xff]  ;;  %v4920_v55 = vld [vmem:[%s6419_s1 + $0xd8] sm:$0xff] }
   0xa   :  { %4189 = vmatpush3.bf16.msra.mxu0 %v4862_v33  ;;  %v4904_v50 = vpack.c.bf16 %v51_v42, %v48_v41  ;;  %v747_v56 = vrot.slane %v667_v48, 6  ;;  %v4922_v57 = vsub.f32 %v13_v16, %v36_v20  ;;  %v744_v58 = vsel %vm722_vm0, %v739_v36, %v743_v46  ;;  %v4931_v60 = vld [vmem:[%s6419_s1 + $0x1e8] sm:$0xff]  ;;  %v4943_v63 = vld [vmem:[%s6419_s1 + $0x1e0] sm:$0xff]  ;;  %v4950_v2 = vld [vmem:[%s6419_s1 + $0xf0] sm:$0xff] }
   0xb   :  { %4190 = vmatprep.subr.bf16.mxu0 %v6427_v24  ;;  %v742_v59 = vsel %vm722_vm0, %v737_v37, %v741_v47  ;;  %v745_v61 = vrot.slane %v666_v53, 6  ;;  %v4938_v62 = vpack.c.bf16 %v57_v52, %v54_v51  ;;  %v60_v0 = vand.u32 4294901760, %v4915_v54  ;;  %v4955_v3 = vld [vmem:[%s6419_s1 + $0x108] sm:$0xff]  ;;  %v26_v8 = vld [vmem:[%s6419_s1 + $0x138] sm:$0x3f]  ;;  %v4971_v9 = vld [vmem:[%s6418_s0] sm:$0xff] }
   0xc   :  { %v63_v1 = vand.u32 4294901760, %v4920_v55  ;;  %v4958_v4 = vsub.f32 %v4828_v17, %v39_v25  ;;  %v4960_v5 = vsub.f32 %v15_v21, %v42_v29  ;;  %v748_v6 = vsel %vm722_vm0, %v743_v46, %v747_v56  ;;  %v4979_v11 = vld [vmem:[%s6419_s1 + $0x200] sm:$0xff]  ;;  %v670_v16 = vld [vmem:[%s6419_s1 + $0x1f8] sm:$0xff]  ;;  %v672_v36 = vld [vmem:[%s6419_s1 + $0x210] sm:$0xff] }
   0xd   :  { %791 = vrot.lane.b32.xlu1 %v736_v34, %s4768_s29  ;;  %789 = vrot.lane.b32.xlu0 %v734_v35, %s4768_s29  ;;  %v751_v7 = vrot.slane %v4931_v60, 6  ;;  %v749_v10 = vrot.slane %v4943_v63, 6  ;;  %v66_v12 = vand.u32 4294901760, %v4950_v2  ;;  %v69_v13 = vand.u32 4294901760, %v4955_v3  ;;  %v4997_v17 = vld [vmem:[%s6419_s1 + $0x120] sm:$0xff]  ;;  %v673_v35 = vld [vmem:[%s6419_s1 + $0x218] sm:$0xff] }
   0xe   :  { %4192 = vmatpush3.bf16.msra.mxu0 %v4871_v38  ;;  %v746_v14 = vsel %vm722_vm0, %v741_v47, %v745_v61  ;;  %v4989_v15 = vpack.c.bf16 %v63_v1, %v60_v0  ;;  %v6422_v18 = vmov 0.0   ;;  %v127_v19 = vand.u32 4294901760, %v4922_v57 }
   0xf   :  { %4193 = vmatprep.subr.bf16.mxu0 %v6427_v24  ;;  %3471 = vmatprep.mubr.msk.f32.mxu0 %vm4770_vm2, %v6422_v18  ;;  %v5005_v20 = vsub.f32 %v4845_v27, %v45_v30  ;;  %v5009_v21 = vsel %vm31_vm1, %v26_v8, 0  ;;  %v29_v22 = vsel %vm27_vm3, %v4971_v9, 0  ;;  %v134_v23 = vand.u32 4294901760, %v4958_v4 }
  0x10   :  { %3657 = vmatprep.mubr.msk.f32.mxu1 %vm4770_vm2, %v6422_v18  ;;  %v752_v25 = vsel %vm722_vm0, %v747_v56, %v751_v7  ;;  %v755_v26 = vrot.slane %v4979_v11, 6  ;;  %v5017_v28 = vand.u32 4294901760, %v29_v22  ;;  %v750_v27 = vsel %vm722_vm0, %v745_v61, %v749_v10 }
  0x11   :  { %795 = vrot.lane.b32.xlu1 %v740_v45, %s4768_s29  ;;  %793 = vrot.lane.b32.xlu0 %v738_v49, %s4768_s29  ;;  %v753_v29 = vrot.slane %v670_v16, 6  ;;  %v5026_v30 = vpack.c.bf16 %v69_v13, %v66_v12  ;;  %v72_v34 = vand.u32 4294901760, %v4997_v17  ;;  %v75_v37 = vand.u32 4294901760, %v5009_v21 }
  0x12   :  { %4195 = vmatpush3.bf16.msra.mxu0 %v4904_v50  ;;  %v5038_v39 = vsub.f32 %v29_v22, %v5017_v28  ;;  %v128_v40 = vsub.f32 %v4922_v57, %v127_v19  ;;  %v135_v45 = vsub.f32 %v4958_v4, %v134_v23  ;;  %v5049_v46 = vsub.f32 %v4855_v31, %v48_v41 }
  0x13   :  { %4196 = vmatprep.subr.bf16.mxu0 %v6427_v24  ;;  %v5054_v47 = vsub.f32 %v4860_v32, %v51_v42  ;;  %v141_v48 = vand.u32 4294901760, %v4960_v5  ;;  %v148_v49 = vand.u32 4294901760, %v5005_v20  ;;  %v5062_v53 = vsub.f32 %v4885_v43, %v54_v51  ;;  %v674_v51 = vld [vmem:[%s6419_s1 + $0x228] sm:$0xff] }
  0x14   :  { %v5067_v31 = vsub.f32 %v4890_v44, %v57_v52  ;;  %v116_v41 = vand.u32 4294901760, %v5038_v39  ;;  %v756_v32 = vsel %vm722_vm0, %v751_v7, %v755_v26  ;;  %v754_v42 = vsel %vm722_vm0, %v749_v10, %v753_v29  ;;  %v675_v44 = vld [vmem:[%s6419_s1 + $0x230] sm:$0xff] }
  0x15   :  { %799 = vrot.lane.b32.xlu1 %v744_v58, %s4768_s29  ;;  %797 = vrot.lane.b32.xlu0 %v742_v59, %s4768_s29  ;;  %v759_v56 = vrot.slane %v673_v35, 6  ;;  %v757_v58 = vrot.slane %v672_v36, 6  ;;  %v5079_v43 = vpack.c.bf16 %v75_v37, %v72_v34  ;;  %v129_v59 = vand.u32 4294901760, %v128_v40 }
  0x16   :  { %4198 = vmatpush3.bf16.msra.mxu0 %v4938_v62  ;;  %v117_v52 = vsub.f32 %v5038_v39, %v116_v41  ;;  %v136_v60 = vand.u32 4294901760, %v135_v45  ;;  %v142_v61 = vsub.f32 %v4960_v5, %v141_v48  ;;  %v149_v63 = vsub.f32 %v5005_v20, %v148_v49 }
  0x17   :  { %4199 = vmatprep.subr.bf16.mxu0 %v6427_v24  ;;  %v162_v7 = vand.u32 4294901760, %v5054_v47  ;;  %v5102_v8 = vsub.f32 %v4915_v54, %v60_v0  ;;  %v5107_v10 = vsub.f32 %v4920_v55, %v63_v1  ;;  %v760_v11 = vsel %vm722_vm0, %v755_v26, %v759_v56  ;;  %v677_v0 = vld [vmem:[%s6419_s1 + $0x248] sm:$0xff]  ;;  %v676_v55 = vld [vmem:[%s6419_s1 + $0x240] sm:$0xff] }
  0x18   :  { %v763_v16 = vrot.slane %v675_v44, 6  ;;  %v761_v22 = vrot.slane %v674_v51, 6  ;;  %v4209_v54 = vpack.c.bf16 %v136_v60, %v129_v59  ;;  %v169_v1 = vand.u32 4294901760, %v5062_v53 }
  0x19   :  { %803 = vrot.lane.b32.xlu1 %v748_v6, %s4768_s29  ;;  %801 = vrot.lane.b32.xlu0 %v746_v14, %s4768_s29  ;;  %v155_v6 = vand.u32 4294901760, %v5049_v46  ;;  %v758_v14 = vsel %vm722_vm0, %v753_v29, %v757_v58  ;;  %v176_v26 = vand.u32 4294901760, %v5067_v31  ;;  %v150_v29 = vand.u32 4294901760, %v149_v63 }
  0x1a   :  { %4201 = vmatpush3.bf16.msra.mxu0 %v4989_v15  ;;  %v163_v36 = vsub.f32 %v5054_v47, %v162_v7  ;;  %v5132_v40 = vsub.f32 %v4950_v2, %v66_v12 }
  0x1b   :  { %4202 = vmatprep.subr.bf16.mxu0 %v6427_v24  ;;  %v156_v35 = vsub.f32 %v5049_v46, %v155_v6 }
  0x1d   :  { %807 = vrot.lane.b32.xlu1 %v752_v25, %s4768_s29  ;;  %805 = vrot.lane.b32.xlu0 %v750_v27, %s4768_s29  ;;  %v118_v25 = vand.u32 4294901760, %v117_v52  ;;  %v143_v27 = vand.u32 4294901760, %v142_v61 }
  0x1e   :  { %4204 = vmatpush3.bf16.msra.mxu0 %v5026_v30 }
  0x1f   :  { %4205 = vmatprep.subr.bf16.mxu0 %v6427_v24 }
  0x21   :  { %811 = vrot.lane.b32.xlu1 %v756_v32, %s4768_s29  ;;  %809 = vrot.lane.b32.xlu0 %v754_v42, %s4768_s29 }
  0x22   :  { %4207 = vmatpush3.bf16.msra.mxu0 %v5079_v43 }
  0x23   :  { %4208 = vmatprep.subr.bf16.mxu0 %v6427_v24 }
  0x24   :  { %7 = vsyncpa [#allocation3], 0  ;;  %v764_v45 = vsel %vm722_vm0, %v759_v56, %v763_v16  ;;  %v762_v32 = vsel %vm722_vm0, %v757_v58, %v761_v22  ;;  %v767_v42 = vrot.slane %v677_v0, 6  ;;  %v765_v44 = vrot.slane %v676_v55, 6  ;;  %v5141_v51 = vld [vmem:[%s6419_s1 + $0x260] sm:$0xff]  ;;  %v5146_v2 = vld [vmem:[%s6419_s1 + $0x258] sm:$0xff] }
  0x25   :  { %815 = vrot.lane.b32.xlu1 %v760_v11, %s4768_s29  ;;  %813 = vrot.lane.b32.xlu0 %v758_v14, %s4768_s29  ;;  %v170_v12 = vsub.f32 %v5062_v53, %v169_v1  ;;  %v177_v56 = vsub.f32 %v5067_v31, %v176_v26  ;;  %v183_v58 = vand.u32 4294901760, %v5102_v8  ;;  %v190_v52 = vand.u32 4294901760, %v5107_v10  ;;  %s4772_s20 = smov 18   ;;  %s4773_s11 = smov 96  }
  0x26   :  { %3472 = vmatmul.mubr.f32.vlgmr.msra.gmra.mrb[0].mxu0 %v118_v25  ;;  %v5159_v59 = vsub.f32 %v4955_v3, %v69_v13  ;;  %v4212_v60 = vpack.c.bf16 %v150_v29, %v143_v27  ;;  %v157_v61 = vand.u32 4294901760, %v156_v35  ;;  %v164_v63 = vand.u32 4294901760, %v163_v36  ;;  %s4774_s16 = smov 16   ;;  %s4775_s19 = smov 36  }
  0x27   :  { %4210 = vmatpush3.bf16.msra.mxu0 %v4209_v54  ;;  %3502 = vmatprep.mubr.msk.f32.mxu0 %vm4770_vm2, %v6422_v18  ;;  %v5166_v11 = vsub.f32 %v4997_v17, %v72_v34  ;;  %v768_v3 = vsel %vm722_vm0, %v763_v16, %v767_v42  ;;  %v766_v13 = vsel %vm722_vm0, %v761_v22, %v765_v44  ;;  %v771_v14 = vrot.slane %v5141_v51, 6  ;;  %v680_v51 = vld [vmem:[%s6419_s1 + $0x270] sm:$0xff]  ;;  %s4776_s9 = smov 54   ;;  %s4780_s10 = smov [#allocation2]  }
  0x28   :  { %4211 = vmatprep.subr.bf16.mxu0 %v6427_v24  ;;  %v769_v25 = vrot.slane %v5146_v2, 6  ;;  %v171_v54 = vand.u32 4294901760, %v170_v12  ;;  %v178_v0 = vand.u32 4294901760, %v177_v56  ;;  %v184_v17 = vsub.f32 %v5102_v8, %v183_v58  ;;  %s3075_s12 = sshll.u32 %s4780_s10, 4  ;;  %s3076_s12 = int_to_ptr.vmem [resolvable:$true] %s3075_s12 }
  0x29   :  { %819 = vrot.lane.b32.xlu1 %v764_v45, %s4768_s29  ;;  %817 = vrot.lane.b32.xlu0 %v762_v32, %s4768_s29  ;;  %v191_v34 = vsub.f32 %v5107_v10, %v190_v52  ;;  %v5184_v16 = vsub.f32 %v5009_v21, %v75_v37  ;;  %v4215_v22 = vpack.c.bf16 %v164_v63, %v157_v61  ;;  %v197_v55 = vand.u32 4294901760, %v5132_v40  ;;  %v681_v21 = vld [vmem:[%s6419_s1 + $0x278] sm:$0xff]  ;;  %v683_v37 = vld [vmem:[%s6419_s1 + $0x290] sm:$0x1f]  ;;  %s4744_s13 = scalar_lea.vmem %s3076_s12, 384  ;;  %p4749_p1 = scmp.lt.s32.totalorder %s3076_s12, %s3076_s12 }
  0x2a   :  { %v204_v27 = vand.u32 4294901760, %v5159_v59  ;;  %v772_v29 = vsel %vm722_vm0, %v767_v42, %v771_v14  ;;  %v770_v35 = vsel %vm722_vm0, %v765_v44, %v769_v25  ;;  %v4218_v36 = vpack.c.bf16 %v178_v0, %v171_v54  ;;  %v682_v42 = vld [vmem:[%s6419_s1 + $0x288] sm:$0x1f]  ;;  %p4745_p0 = scmp.ne.s32.totalorder %s3076_s12, %s4744_s13  ;;  %p4750_p2 = scmp.lt.s32.totalorder %s4744_s13, %s4744_s13 }
  0x2b   :  { %4213 = vmatpush3.bf16.msra.mxu0 %v4212_v60  ;;  %v185_v45 = vand.u32 4294901760, %v184_v17  ;;  %v192_v32 = vand.u32 4294901760, %v191_v34  ;;  %v198_v44 = vsub.f32 %v5132_v40, %v197_v55  ;;  %v211_v12 = vand.u32 4294901760, %v5166_v11  ;;  %v5219_v61 = vld [vmem:[%s6418_s0 + $0x8] sm:$0xff] }
  0x2c   :  { %4214 = vmatprep.subr.bf16.mxu0 %v6427_v24  ;;  %v205_v2 = vsub.f32 %v5159_v59, %v204_v27  ;;  %v218_v56 = vand.u32 4294901760, %v5184_v16  ;;  %v775_v60 = vrot.slane %v681_v21, 6  ;;  %v779_v63 = vrot.slane %v683_v37, 6  ;;  %v5238_v21 = vld [vmem:[%s6419_s1 + $0x2c0] sm:$0xff]  ;;  %v1496_v37 = vld [vmem:[%s6419_s1 + $0x290] sm:$0xf0]  ;;  %p4751_p3 = por %p4750_p2, %p4749_p1 }
  0x2d   :  { %823 = vrot.lane.b32.xlu1 %v768_v3, %s4768_s29  ;;  %821 = vrot.lane.b32.xlu0 %v766_v13, %s4768_s29  ;;  %v773_v3 = vrot.slane %v680_v51, 6  ;;  %v777_v13 = vrot.slane %v682_v42, 6  ;;  %v4221_v54 = vpack.c.bf16 %v192_v32, %v185_v45  ;;  %v199_v0 = vand.u32 4294901760, %v198_v44 }
  0x2e   :  { %v206_v17 = vand.u32 4294901760, %v205_v2  ;;  %v212_v34 = vsub.f32 %v5166_v11, %v211_v12  ;;  %v1538_v42 = vrot.slane %v5238_v21, 4  ;;  %v1535_v44 = vrot.slane %v1496_v37, 4  ;;  %p4752_p4 = pnand %p4751_p3, %p4745_p0 }
  0x2f   :  { %4216 = vmatpush3.bf16.msra.mxu0 %v4215_v22  ;;  %v219_v22 = vsub.f32 %v5184_v16, %v218_v56  ;;  %v776_v2 = vsel %vm722_vm0, %v771_v14, %v775_v60  ;;  %vm1534_vm4 = vcmask 1043456   ;;  %v2232_v14 = vld [vmem:[%s6419_s1 + $0x3e0] sm:$0xfc]  ;;  %v4236_v37 = vpack.c.bf16 %v5054_v47, %v5049_v46 }
  0x30   :  { %4217 = vmatprep.subr.bf16.mxu0 %v6427_v24  ;;  %v4224_v45 = vpack.c.bf16 %v206_v17, %v199_v0  ;;  %v5259_v0 = vpack.c.bf16 %v134_v23, %v127_v19  ;;  %v5278_v19 = vpack.c.bf16 %v162_v7, %v155_v6  ;;  %v5294_v6 = vpack.c.bf16 %v190_v52, %v183_v58 }
  0x31   :  { %827 = vrot.lane.b32.xlu1 %v772_v29, %s4768_s29  ;;  %825 = vrot.lane.b32.xlu0 %v770_v35, %s4768_s29  ;;  %v780_v29 = vsel %vm722_vm0, %v775_v60, %v779_v63  ;;  %v778_v35 = vsel %vm722_vm0, %v773_v3, %v777_v13  ;;  %v220_v32 = vand.u32 4294901760, %v219_v22  ;;  %v774_v63 = vsel %vm722_vm0, %v769_v25, %v773_v3  ;;  %v2233_v13 = vld [vmem:[%s6419_s1 + $0x3e8] sm:$0xfc]  ;;  %v2234_v25 = vld [vmem:[%s6419_s1 + $0x3f8] sm:$0xff] }
  0x32   :  { %v5271_v60 = vpack.c.bf16 %v148_v49, %v141_v48  ;;  %v2300_v48 = vrot.slane %v2232_v14, 2  ;;  %v2301_v49 = vrot.slane %v2234_v25, 2  ;;  %v4230_v7 = vpack.c.bf16 %v4958_v4, %v4922_v57  ;;  %v1502_v14 = vld [vmem:[%s6419_s1 + $0x320] sm:$0xff] }
  0x33   :  { %4219 = vmatpush3.bf16.msra.mxu0 %v4218_v36  ;;  %v1497_v36 = vld [vmem:[%s6419_s1 + $0x2a8] sm:$0xff]  ;;  %v5315_v57 = vpack.c.bf16 %v218_v56, %v211_v12  ;;  %v1500_v12 = vld [vmem:[%s6419_s1 + $0x2f0] sm:$0xff]  ;;  %v4239_v47 = vpack.c.bf16 %v5067_v31, %v5062_v53  ;;  %v4242_v31 = vpack.c.bf16 %v5107_v10, %v5102_v8  ;;  %v1546_v8 = vrot.slane %v1502_v14, 4  ;;  %v2250_v14 = vld [vmem:[%s6419_s1 + $0x4b8] sm:$0xff] }
  0x34   :  { %4220 = vmatprep.subr.bf16.mxu0 %v6427_v24  ;;  %v1536_v51 = vrot.slane %v1497_v36, 4  ;;  %v2236_v36 = vld [vmem:[%s6419_s1 + $0x410] sm:$0xff]  ;;  %v1542_v21 = vrot.slane %v1500_v12, 4  ;;  %v4245_v10 = vpack.c.bf16 %v5159_v59, %v5132_v40  ;;  %v4248_v59 = vpack.c.bf16 %v5184_v16, %v5166_v11  ;;  %v1503_v16 = vld [vmem:[%s6419_s1 + $0x338] sm:$0xff] }
  0x35   :  { %688 = vrot.lane.b32.xlu1 %v5219_v61, %s4772_s20  ;;  %686 = vrot.lane.b32.xlu0 %v4971_v9, %s4772_s20  ;;  %v213_v9 = vand.u32 4294901760, %v212_v34  ;;  %v2303_v34 = vrot.slane %v2233_v13, 2  ;;  %v2306_v52 = vrot.slane %v2236_v36, 2  ;;  %v2244_v36 = vld [vmem:[%s6419_s1 + $0x470] sm:$0xff]  ;;  %v1548_v12 = vrot.slane %v1503_v16, 4 }
  0x36   :  { %v1539_v23 = vsel %vm1534_vm4, %v1536_v51, %v1538_v42  ;;  %v1537_v3 = vsel %vm1534_vm4, %v1535_v44, %v1536_v51  ;;  %v2322_v11 = vrot.slane %v2244_v36, 2  ;;  %vm837_vm5 = vcmask 392192  }
  0x37   :  { %4222 = vmatpush3.bf16.msra.mxu0 %v4221_v54  ;;  %v2235_v54 = vld [vmem:[%s6419_s1 + $0x400] sm:$0xff]  ;;  %v4227_v17 = vpack.c.bf16 %v220_v32, %v213_v9  ;;  %v2238_v9 = vld [vmem:[%s6419_s1 + $0x428] sm:$0xff]  ;;  %vm690_vm6 = vcmask 146432   ;;  %vm865_vm7 = vcmask 908288   ;;  %vm868_vm8 = vcmask 1046528  }
  0x38   :  { %4223 = vmatprep.subr.bf16.mxu0 %v6427_v24  ;;  %v2304_v22 = vrot.slane %v2235_v54, 2  ;;  %v2310_v46 = vrot.slane %v2238_v9, 2  ;;  %vm2414_vm9 = vcmask 130048   ;;  %vm1517_vm10 = vcmask 293888  }
  0x39   :  { %835 = vrot.lane.b32.xlu1 %v780_v29, %s4768_s29  ;;  %833 = vrot.lane.b32.xlu0 %v778_v35, %s4768_s29  ;;  %v5288_v29 = vpack.c.bf16 %v176_v26, %v169_v1  ;;  %v2237_v35 = vld [vmem:[%s6419_s1 + $0x418] sm:$0xff]  ;;  %v5309_v1 = vpack.c.bf16 %v204_v27, %v197_v55  ;;  %v2302_v26 = vsel %vm31_vm1, %v2300_v48, %v2301_v49  ;;  %vm2268_vm11 = vcmask 441344  }
  0x3a   :  { %v2305_v4 = vsel %vm31_vm1, %v2303_v34, %v2304_v22  ;;  %v2308_v58 = vrot.slane %v2237_v35, 2  ;;  %v4233_v55 = vpack.c.bf16 %v5005_v20, %v4960_v5  ;;  %v1499_v27 = vld [vmem:[%s6419_s1 + $0x2d8] sm:$0xff]  ;;  %v2307_v20 = vsel %vm31_vm1, %v2301_v49, %v2306_v52  ;;  %v2243_v34 = vld [vmem:[%s6419_s1 + $0x460] sm:$0xff] }
  0x3b   :  { %4225 = vmatpush3.bf16.msra.mxu0 %v4224_v45  ;;  %v1540_v56 = vrot.slane %v1499_v27, 4  ;;  %v2239_v45 = vld [vmem:[%s6419_s1 + $0x430] sm:$0xff]  ;;  %v2311_v13 = vsel %vm31_vm1, %v2306_v52, %v2310_v46  ;;  %v2245_v35 = vld [vmem:[%s6419_s1 + $0x478] sm:$0xff]  ;;  %vm650_vm12 = vcmask 654336   ;;  %vm1490_vm13 = vcmask 1048192  }
  0x3c   :  { %4226 = vmatprep.subr.bf16.mxu0 %v6427_v24  ;;  %v2309_v5 = vsel %vm31_vm1, %v2304_v22, %v2308_v58  ;;  %v2312_v44 = vrot.slane %v2239_v45, 2  ;;  %v2242_v22 = vld [vmem:[%s6419_s1 + $0x458] sm:$0xff]  ;;  %v1504_v52 = vld [vmem:[%s6419_s1 + $0x350] sm:$0xff]  ;;  %vm1492_vm14 = vcmask 261120   ;;  %vm2228_vm15 = vcmask 916736  }
  0x3d   :  { %831 = vrot.lane.b32.xlu1 %v776_v2, %s4768_s29  ;;  %829 = vrot.lane.b32.xlu0 %v774_v63, %s4768_s29  ;;  %v1543_v32 = vsel %vm1534_vm4, %v1540_v56, %v1542_v21  ;;  %v1541_v51 = vsel %vm1534_vm4, %v1538_v42, %v1540_v56  ;;  %v2241_v2 = vld [vmem:[%s6419_s1 + $0x448] sm:$0xff]  ;;  %v2240_v63 = vld [vmem:[%s6419_s1 + $0x440] sm:$0xff]  ;;  %v2318_v40 = vrot.slane %v2242_v22, 2  ;;  %vm3065_vm0 = vcmask 1048448  }
  0x3e   :  { %v2313_v42 = vsel %vm31_vm1, %v2308_v58, %v2312_v44  ;;  %v2316_v54 = vrot.slane %v2241_v2, 2  ;;  %v2314_v53 = vrot.slane %v2240_v63, 2  ;;  %v2324_v58 = vrot.slane %v2245_v35, 2  ;;  %v2246_v56 = vld [vmem:[%s6419_s1 + $0x488] sm:$0xff] }
  0x3f   :  { %4228 = vmatpush3.bf16.msra.mxu0 %v4227_v17  ;;  %v1501_v17 = vld [vmem:[%s6419_s1 + $0x308] sm:$0xff]  ;;  %v2323_v27 = vsel %vm31_vm1, %v2318_v40, %v2322_v11  ;;  %v2326_v9 = vrot.slane %v2246_v56, 2 }
  0x40   :  { %4229 = vmatprep.subr.bf16.mxu0 %v6427_v24  ;;  %v2317_v25 = vsel %vm31_vm1, %v2312_v44, %v2316_v54  ;;  %v1505_v63 = vld [vmem:[%s6419_s1 + $0x368] sm:$0xff] }
  0x41   :  { %1566 = vrot.lane.b32.xlu1 %v1539_v23, %s4773_s11  ;;  %1564 = vrot.lane.b32.xlu0 %v1537_v3, %s4773_s11  ;;  %v2315_v23 = vsel %vm31_vm1, %v2310_v46, %v2314_v53  ;;  %v1544_v3 = vrot.slane %v1501_v17, 4  ;;  %v2327_v46 = vsel %vm31_vm1, %v2322_v11, %v2326_v9  ;;  %v2251_v17 = vld [vmem:[%s6419_s1 + $0x4c0] sm:$0xff] }
  0x42   :  { %3503 = vmatmul.mubr.f32.vlgmr.msra.gmra.mrb[0].mxu0 %v5017_v28 }
  0x43   :  { %4231 = vmatpush3.bf16.msra.mxu0 %v4230_v7  ;;  %3533 = vmatprep.mubr.msk.f32.mxu0 %vm4770_vm2, %v6422_v18  ;;  %v1547_v48 = vsel %vm1534_vm4, %v1544_v3, %v1546_v8  ;;  %v1545_v49 = vsel %vm1534_vm4, %v1542_v21, %v1544_v3  ;;  %v2320_v7 = vrot.slane %v2243_v34, 2  ;;  %v2336_v3 = vrot.slane %v2251_v17, 2  ;;  %v5478_v34 = vld [vmem:[%s6419_s1 + $0x4d0] sm:$0xff] }
  0x44   :  { %4232 = vmatprep.subr.bf16.mxu0 %v6427_v24 }
  0x45   :  { %2360 = vrot.lane.b32.xlu1 %v2305_v4, %s4774_s16  ;;  %2358 = vrot.lane.b32.xlu0 %v2302_v26, %s4774_s16  ;;  %v2321_v4 = vsel %vm31_vm1, %v2316_v54, %v2320_v7  ;;  %v2319_v26 = vsel %vm31_vm1, %v2314_v53, %v2318_v40  ;;  %v1552_v53 = vrot.slane %v1505_v63, 4 }
  0x47   :  { %4234 = vmatpush3.bf16.msra.mxu0 %v4233_v55  ;;  %v2325_v55 = vsel %vm31_vm1, %v2320_v7, %v2324_v58  ;;  %v2338_v7 = vrot.slane %v5478_v34, 2 }
  0x48   :  { %4235 = vmatprep.subr.bf16.mxu0 %v6427_v24 }
  0x49   :  { %2364 = vrot.lane.b32.xlu1 %v2309_v5, %s4774_s16  ;;  %2362 = vrot.lane.b32.xlu0 %v2307_v20, %s4774_s16  ;;  %v1550_v5 = vrot.slane %v1504_v52, 4  ;;  %v2247_v20 = vld [vmem:[%s6419_s1 + $0x490] sm:$0xff] }
  0x4a   :  { %v2328_v45 = vrot.slane %v2247_v20, 2 }
  0x4b   :  { %4237 = vmatpush3.bf16.msra.mxu0 %v4236_v37  ;;  %v1551_v21 = vsel %vm1534_vm4, %v1548_v12, %v1550_v5  ;;  %v1549_v37 = vsel %vm1534_vm4, %v1546_v8, %v1548_v12  ;;  %v2334_v8 = vrot.slane %v2250_v14, 2  ;;  %v2254_v12 = vld [vmem:[%s6419_s1 + $0x4e8] sm:$0xff] }
  0x4c   :  { %4238 = vmatprep.subr.bf16.mxu0 %v6427_v24  ;;  %v2329_v44 = vsel %vm31_vm1, %v2324_v58, %v2328_v45  ;;  %v5508_v58 = vld [vmem:[%s6418_s0 + $0x10] sm:$0xff] }
  0x4d   :  { %1570 = vrot.lane.b32.xlu1 %v1543_v32, %s4773_s11  ;;  %1568 = vrot.lane.b32.xlu0 %v1541_v51, %s4773_s11  ;;  %v2249_v32 = vld [vmem:[%s6419_s1 + $0x4a8] sm:$0xff]  ;;  %v2248_v51 = vld [vmem:[%s6419_s1 + $0x4a0] sm:$0xff] }
  0x4e   :  { %v2330_v2 = vrot.slane %v2248_v51, 2 }
  0x4f   :  { %4240 = vmatpush3.bf16.msra.mxu0 %v4239_v47  ;;  %v2332_v47 = vrot.slane %v2249_v32, 2 }
  0x50   :  { %4241 = vmatprep.subr.bf16.mxu0 %v6427_v24  ;;  %v2331_v54 = vsel %vm31_vm1, %v2326_v9, %v2330_v2 }
  0x51   :  { %2368 = vrot.lane.b32.xlu1 %v2313_v42, %s4774_s16  ;;  %2366 = vrot.lane.b32.xlu0 %v2311_v13, %s4774_s16  ;;  %v5447_v42 = vld [vmem:[%s6419_s1 + $0x380] sm:$0xff]  ;;  %v2333_v13 = vsel %vm31_vm1, %v2328_v45, %v2332_v47  ;;  %v2337_v22 = vsel %vm31_vm1, %v2332_v47, %v2336_v3 }
  0x52   :  { %v5550_v47 = vld [vmem:[%s6419_s1 + $0x500] sm:$0xff] }
  0x53   :  { %4243 = vmatpush3.bf16.msra.mxu0 %v4242_v31  ;;  %v1554_v31 = vrot.slane %v5447_v42, 4  ;;  %v2346_v17 = vrot.slane %v5550_v47, 2 }
  0x54   :  { %4244 = vmatprep.subr.bf16.mxu0 %v6427_v24 }
  0x55   :  { %2372 = vrot.lane.b32.xlu1 %v2317_v25, %s4774_s16  ;;  %2370 = vrot.lane.b32.xlu0 %v2315_v23, %s4774_s16  ;;  %v1555_v25 = vsel %vm1534_vm4, %v1552_v53, %v1554_v31  ;;  %v1553_v23 = vsel %vm1534_vm4, %v1550_v5, %v1552_v53 }
  0x57   :  { %4246 = vmatpush3.bf16.msra.mxu0 %v4245_v10  ;;  %v5473_v10 = vld [vmem:[%s6419_s1 + $0x4d8] sm:$0xff] }
  0x58   :  { %4247 = vmatprep.subr.bf16.mxu0 %v6427_v24 }
  0x59   :  { %1574 = vrot.lane.b32.xlu1 %v1547_v48, %s4773_s11  ;;  %1572 = vrot.lane.b32.xlu0 %v1545_v49, %s4773_s11  ;;  %v2335_v48 = vsel %vm31_vm1, %v2330_v2, %v2334_v8  ;;  %v2340_v49 = vrot.slane %v5473_v10, 2 }
  0x5b   :  { %4249 = vmatpush3.bf16.msra.mxu0 %v4248_v59  ;;  %v2341_v40 = vsel %vm31_vm1, %v2336_v3, %v2340_v49  ;;  %v2339_v59 = vsel %vm31_vm1, %v2334_v8, %v2338_v7  ;;  %v5581_v8 = vld [vmem:[%s6419_s1 + $0x518] sm:$0xff] }
  0x5c   :  { %4250 = vmatprep.subr.bf16.mxu0 %v6427_v24 }
  0x5d   :  { %2376 = vrot.lane.b32.xlu1 %v2321_v4, %s4774_s16  ;;  %2374 = vrot.lane.b32.xlu0 %v2319_v26, %s4774_s16  ;;  %v1507_v4 = vld [vmem:[%s6419_s1 + $0x398] sm:$0xff]  ;;  %v5500_v26 = vld [vmem:[%s6419_s1 + $0x3b0] sm:$0xff] }
  0x5e   :  { %3534 = vmatmul.mubr.f32.vlgmr.msra.gmra.mrb[0].mxu0 %v5038_v39  ;;  %v1556_v11 = vrot.slane %v1507_v4, 4  ;;  %v1558_v16 = vrot.slane %v5500_v26, 4 }
  0x5f   :  { %4252 = vmatpush3.bf16.msra.mxu0 %v4862_v33  ;;  %3564 = vmatprep.mubr.msk.f32.mxu0 %vm4770_vm2, %v6422_v18 }
  0x60   :  { %4253 = vmatprep.subr.bf16.mxu0 %v6427_v24 }
  0x61   :  { %2380 = vrot.lane.b32.xlu1 %v2325_v55, %s4774_s16  ;;  %2378 = vrot.lane.b32.xlu0 %v2323_v27, %s4774_s16  ;;  %v2255_v27 = vld [vmem:[%s6419_s1 + $0x4f0] sm:$0xff] }
  0x62   :  { %v2344_v56 = vrot.slane %v2255_v27, 2 }
  0x63   :  { %4255 = vmatpush3.bf16.msra.mxu0 %v4871_v38 }
  0x64   :  { %4256 = vmatprep.subr.bf16.mxu0 %v6427_v24 }
  0x65   :  { %1578 = vrot.lane.b32.xlu1 %v1551_v21, %s4773_s11  ;;  %1576 = vrot.lane.b32.xlu0 %v1549_v37, %s4773_s11  ;;  %v2342_v21 = vrot.slane %v2254_v12, 2 }
  0x67   :  { %4258 = vmatpush3.bf16.msra.mxu0 %v4904_v50 }
  0x68   :  { %4259 = vmatprep.subr.bf16.mxu0 %v6427_v24 }
  0x69   :  { %2384 = vrot.lane.b32.xlu1 %v2329_v44, %s4774_s16  ;;  %2382 = vrot.lane.b32.xlu0 %v2327_v46, %s4774_s16  ;;  %v1557_v44 = vsel %vm1534_vm4, %v1554_v31, %v1556_v11  ;;  %v2343_v31 = vsel %vm31_vm1, %v2338_v7, %v2342_v21  ;;  %v2260_v7 = vld [vmem:[%s6419_s1 + $0x530] sm:$0x1] }
  0x6b   :  { %4261 = vmatpush3.bf16.msra.mxu0 %v4938_v62 }
  0x6c   :  { %4262 = vmatprep.subr.bf16.mxu0 %v6427_v24 }
  0x6d   :  { %2388 = vrot.lane.b32.xlu1 %v2333_v13, %s4774_s16  ;;  %2386 = vrot.lane.b32.xlu0 %v2331_v54, %s4774_s16 }
  0x6f   :  { %4264 = vmatpush3.bf16.msra.mxu0 %v4989_v15 }
  0x70   :  { %4265 = vmatprep.subr.bf16.mxu0 %v6427_v24 }
  0x71   :  { %1582 = vrot.lane.b32.xlu1 %v1555_v25, %s4773_s11  ;;  %1580 = vrot.lane.b32.xlu0 %v1553_v23, %s4773_s11 }
  0x73   :  { %4267 = vmatpush3.bf16.msra.mxu0 %v5026_v30 }
  0x74   :  { %4268 = vmatprep.subr.bf16.mxu0 %v6427_v24 }
  0x75   :  { %2392 = vrot.lane.b32.xlu1 %v2337_v22, %s4774_s16  ;;  %2390 = vrot.lane.b32.xlu0 %v2335_v48, %s4774_s16 }
  0x77   :  { %v786_v35 = vpop.permute.xlu1 %785  ;;  %v782_v36 = vpop.permute.xlu0 %781  ;;  %4270 = vmatpush3.bf16.msra.mxu0 %v5079_v43 }
  0x78   :  { %4271 = vmatprep.subr.bf16.mxu0 %v6427_v24 }
  0x79   :  { %2396 = vrot.lane.b32.xlu1 %v2341_v40, %s4774_s16  ;;  %2394 = vrot.lane.b32.xlu0 %v2339_v59, %s4774_s16  ;;  %v1509_v40 = vld [vmem:[%s6419_s1 + $0x3c8] sm:$0xff]  ;;  %v1510_v59 = vld [vmem:[%s6419_s1 + $0x3e0] sm:$0x7] }
  0x7a   :  { %3565 = vmatmul.mubr.f32.vlgmr.msra.gmra.mrb[0].mxu0 %v116_v41  ;;  %v1560_v27 = vrot.slane %v1509_v40, 4  ;;  %v1562_v12 = vrot.slane %v1510_v59, 4 }
  0x7b   :  { %v788_v52 = vpop.permute.xlu1 %787  ;;  %v784_v55 = vpop.permute.xlu0 %783  ;;  %4273 = vmatpush3.bf16.msra.mxu0 %v5259_v0  ;;  %3595 = vmatprep.mubr.msk.f32.mxu0 %vm4770_vm2, %v6422_v18  ;;  %v1559_v0 = vsel %vm1534_vm4, %v1556_v11, %v1558_v16  ;;  %v2231_v11 = vld [vmem:[%s6418_s0 + $0x18] sm:$0xff] }
  0x7c   :  { %v839_v39 = vsel %vm837_vm5, %v786_v35, %v788_v52  ;;  %v838_v41 = vsel %vm837_vm5, %v782_v36, %v784_v55  ;;  %4274 = vmatprep.subr.bf16.mxu0 %v6427_v24  ;;  %v2350_v52 = vrot.slane %v5581_v8, 2  ;;  %v2354_v55 = vrot.slane %v2260_v7, 2 }
  0x7d   :  { %v875_v5 = vand.u32 4294901760, %v839_v39  ;;  %v872_v20 = vand.u32 4294901760, %v838_v41  ;;  %1515 = vrot.lane.b32.xlu1 %v5508_v58, %s4775_s19  ;;  %1513 = vrot.lane.b32.xlu0 %v5219_v61, %s4775_s19  ;;  %v5543_v61 = vld [vmem:[%s6419_s1 + $0x508] sm:$0xff] }
  0x7e   :  { %v2348_v13 = vrot.slane %v5543_v61, 2 }
  0x7f   :  { %v5530_v37 = vsub.f32 %v839_v39, %v875_v5  ;;  %v5532_v45 = vsub.f32 %v838_v41, %v872_v20  ;;  %v792_v9 = vpop.permute.xlu1 %791  ;;  %v790_v32 = vpop.permute.xlu0 %789  ;;  %v5534_v51 = vpack.c.bf16 %v875_v5, %v872_v20  ;;  %4276 = vmatpush3.bf16.msra.mxu0 %v5271_v60  ;;  %v2345_v60 = vsel %vm31_vm1, %v2340_v49, %v2344_v56 }
  0x80   :  { %v840_v46 = vsel %vm837_vm5, %v790_v32, %v792_v9  ;;  %4277 = vmatprep.subr.bf16.mxu0 %v6427_v24  ;;  %v2347_v49 = vsel %vm31_vm1, %v2342_v21, %v2346_v17  ;;  %v2355_v9 = vsel %vm31_vm1, %v2350_v52, %v2354_v55  ;;  %v1563_v32 = vsel %vm1534_vm4, %v1560_v27, %v1562_v12 }
  0x81   :  { %v970_v2 = vand.u32 4294901760, %v5530_v37  ;;  %v963_v63 = vand.u32 4294901760, %v5532_v45  ;;  %v878_v42 = vand.u32 4294901760, %v840_v46  ;;  %4315 = vmatpush3.bf16.msra.mxu1 %v5534_v51  ;;  %1586 = vrot.lane.b32.xlu1 %v1559_v0, %s4773_s11  ;;  %v2259_v0 = vld [vmem:[%s6419_s1 + $0x520] sm:$0xff] }
  0x82   :  { %1584 = vrot.lane.b32.xlu0 %v1557_v44, %s4773_s11  ;;  %4316 = vmatprep.subr.bf16.mxu1 %v6427_v24 }
  0x83   :  { %v796_v54 = vpop.permute.xlu1 %795  ;;  %v794_v53 = vpop.permute.xlu0 %793  ;;  %4279 = vmatpush3.bf16.msra.mxu0 %v5278_v19  ;;  %v5567_v14 = vpack.c.bf16 %v970_v2, %v963_v63  ;;  %v5571_v23 = vsub.f32 %v840_v46, %v878_v42  ;;  %v2349_v19 = vsel %vm31_vm1, %v2344_v56, %v2348_v13  ;;  %v2261_v56 = vld [vmem:[%s6419_s1 + $0x538] sm:$0x1]  ;;  %s4777_s1 = smov 80  }
  0x84   :  { %v841_v25 = vsel %vm837_vm5, %v794_v53, %v796_v54  ;;  %4280 = vmatprep.subr.bf16.mxu0 %v6427_v24  ;;  %v2352_v54 = vrot.slane %v2259_v0, 2  ;;  %v2356_v53 = vrot.slane %v2261_v56, 2 }
  0x85   :  { %v881_v3 = vand.u32 4294901760, %v841_v25  ;;  %2400 = vrot.lane.b32.xlu1 %v2345_v60, %s4774_s16  ;;  %v977_v36 = vand.u32 4294901760, %v5571_v23 }
  0x86   :  { %2398 = vrot.lane.b32.xlu0 %v2343_v31, %s4774_s16 }
  0x87   :  { %v5583_v10 = vsub.f32 %v841_v25, %v881_v3  ;;  %v800_v34 = vpop.permute.xlu1 %799  ;;  %v798_v22 = vpop.permute.xlu0 %797  ;;  %v5585_v48 = vpack.c.bf16 %v881_v3, %v878_v42  ;;  %4282 = vmatpush3.bf16.msra.mxu0 %v5288_v29 }
  0x88   :  { %v842_v35 = vsel %vm837_vm5, %v798_v22, %v800_v34  ;;  %4283 = vmatprep.subr.bf16.mxu0 %v6427_v24  ;;  %v2357_v34 = vsel %vm31_vm1, %v2352_v54, %v2356_v53 }
  0x89   :  { %v984_v29 = vand.u32 4294901760, %v5583_v10  ;;  %v884_v4 = vand.u32 4294901760, %v842_v35  ;;  %4318 = vmatpush3.bf16.msra.mxu1 %v5585_v48  ;;  %2404 = vrot.lane.b32.xlu1 %v2349_v19, %s4774_s16 }
  0x8a   :  { %2402 = vrot.lane.b32.xlu0 %v2347_v49, %s4774_s16  ;;  %4319 = vmatprep.subr.bf16.mxu1 %v6427_v24 }
  0x8b   :  { %v804_v39 = vpop.permute.xlu1 %803  ;;  %v802_v41 = vpop.permute.xlu0 %801  ;;  %4285 = vmatpush3.bf16.msra.mxu0 %v5294_v6  ;;  %v5617_v5 = vpack.c.bf16 %v984_v29, %v977_v36  ;;  %v5627_v21 = vsub.f32 %v842_v35, %v884_v4 }
  0x8c   :  { %v843_v20 = vsel %vm837_vm5, %v802_v41, %v804_v39  ;;  %4286 = vmatprep.subr.bf16.mxu0 %v6427_v24 }
  0x8d   :  { %v887_v6 = vand.u32 4294901760, %v843_v20  ;;  %2266 = vrot.lane.b32.xlu1 %v2231_v11, %s4776_s9 }
  0x8e   :  { %2264 = vrot.lane.b32.xlu0 %v5508_v58, %s4776_s9  ;;  %v991_v58 = vand.u32 4294901760, %v5627_v21 }
  0x8f   :  { %v5632_v44 = vsub.f32 %v843_v20, %v887_v6  ;;  %v808_v46 = vpop.permute.xlu1 %807  ;;  %v806_v42 = vpop.permute.xlu0 %805  ;;  %v5634_v60 = vpack.c.bf16 %v887_v6, %v884_v4  ;;  %4288 = vmatpush3.bf16.msra.mxu0 %v5309_v1  ;;  %v1561_v1 = vsel %vm1534_vm4, %v1558_v16, %v1560_v27  ;;  %v2351_v4 = vsel %vm31_vm1, %v2346_v17, %v2350_v52 }
  0x90   :  { %v844_v31 = vsel %vm837_vm5, %v806_v42, %v808_v46  ;;  %4289 = vmatprep.subr.bf16.mxu0 %v6427_v24 }
  0x91   :  { %v998_v25 = vand.u32 4294901760, %v5632_v44  ;;  %v890_v3 = vand.u32 4294901760, %v844_v31  ;;  %4321 = vmatpush3.bf16.msra.mxu1 %v5634_v60  ;;  %2410 = vrot.lane.b32.xlu1 %v2355_v9, %s4774_s16 }
  0x92   :  { %1590 = vrot.lane.b32.xlu0 %v1563_v32, %s4773_s11  ;;  %4322 = vmatprep.subr.bf16.mxu1 %v6427_v24 }
  0x93   :  { %v812_v19 = vpop.permute.xlu1 %811  ;;  %v810_v8 = vpop.permute.xlu0 %809  ;;  %4291 = vmatpush3.bf16.msra.mxu0 %v5315_v57  ;;  %v5654_v22 = vpack.c.bf16 %v998_v25, %v991_v58  ;;  %v5658_v26 = vsub.f32 %v844_v31, %v890_v3  ;;  %v2353_v57 = vsel %vm31_vm1, %v2348_v13, %v2352_v54  ;;  %vm3067_vm1 = vcmask 523264  }
  0x94   :  { %v845_v49 = vsel %vm837_vm5, %v810_v8, %v812_v19  ;;  %4292 = vmatprep.subr.bf16.mxu0 %v6427_v24 }
  0x95   :  { %v893_v16 = vand.u32 4294901760, %v845_v49  ;;  %1588 = vrot.lane.b32.xlu1 %v1561_v1, %s4773_s11  ;;  %v1005_v61 = vand.u32 4294901760, %v5658_v26  ;;  %s4778_s11 = smov 32  }
  0x96   :  { %3596 = vmatmul.mubr.f32.vlgmr.msra.gmra.mrb[0].mxu0 %v5017_v28  ;;  %2412 = vrot.lane.b32.xlu0 %v2357_v34, %s4774_s16 }
  0x97   :  { %v5666_v7 = vsub.f32 %v845_v49, %v893_v16  ;;  %v816_v40 = vpop.permute.xlu1 %815  ;;  %v814_v59 = vpop.permute.xlu0 %813  ;;  %v5668_v35 = vpack.c.bf16 %v893_v16, %v890_v3  ;;  %4294 = vmatpush3.bf16.msra.mxu0 %v4862_v33  ;;  %3626 = vmatprep.mubr.msk.f32.mxu0 %vm4770_vm2, %v6422_v18 }
  0x98   :  { %v846_v11 = vsel %vm837_vm5, %v814_v59, %v816_v40  ;;  %4295 = vmatprep.subr.bf16.mxu0 %v6427_v24 }
  0x99   :  { %v1012_v13 = vand.u32 4294901760, %v5666_v7  ;;  %v896_v55 = vand.u32 4294901760, %v846_v11  ;;  %4324 = vmatpush3.bf16.msra.mxu1 %v5668_v35  ;;  %2408 = vrot.lane.b32.xlu1 %v2353_v57, %s4774_s16 }
  0x9a   :  { %4325 = vmatprep.subr.bf16.mxu1 %v6427_v24  ;;  %2406 = vrot.lane.b32.xlu0 %v2351_v4, %s4774_s16  ;;  %s4779_s16 = smov 112  }
  0x9b   :  { %v820_v33 = vpop.permute.xlu1 %819  ;;  %v818_v47 = vpop.permute.xlu0 %817  ;;  %4297 = vmatpush3.bf16.msra.mxu0 %v4871_v38  ;;  %v5689_v17 = vpack.c.bf16 %v1012_v13, %v1005_v61  ;;  %v5693_v27 = vsub.f32 %v846_v11, %v896_v55 }
  0x9c   :  { %v847_v52 = vsel %vm837_vm5, %v818_v47, %v820_v33  ;;  %4298 = vmatprep.subr.bf16.mxu0 %v6427_v24  ;;  %v964_v47 = vsub.f32 %v5532_v45, %v963_v63  ;;  %v985_v63 = vsub.f32 %v5583_v10, %v984_v29  ;;  %v999_v29 = vsub.f32 %v5632_v44, %v998_v25 }
  0x9d   :  { %v899_v12 = vand.u32 4294901760, %v847_v52  ;;  %v1019_v56 = vand.u32 4294901760, %v5693_v27  ;;  %v992_v25 = vsub.f32 %v5627_v21, %v991_v58 }
  0x9f   :  { %v5695_v39 = vsub.f32 %v847_v52, %v899_v12  ;;  %v824_v41 = vpop.permute.xlu1 %823  ;;  %v822_v20 = vpop.permute.xlu0 %821  ;;  %v5697_v0 = vpack.c.bf16 %v899_v12, %v896_v55  ;;  %4300 = vmatpush3.bf16.msra.mxu0 %v4904_v50  ;;  %v971_v55 = vsub.f32 %v5530_v37, %v970_v2 }
  0xa0   :  { %v848_v38 = vsel %vm837_vm5, %v822_v20, %v824_v41  ;;  %4301 = vmatprep.subr.bf16.mxu0 %v6427_v24 }
  0xa1   :  { %v1026_v6 = vand.u32 4294901760, %v5695_v39  ;;  %v902_v9 = vand.u32 4294901760, %v848_v38  ;;  %4327 = vmatpush3.bf16.msra.mxu1 %v5697_v0 }
  0xa2   :  { %4328 = vmatprep.subr.bf16.mxu1 %v6427_v24 }
  0xa3   :  { %v828_v32 = vpop.permute.xlu1 %827  ;;  %v826_v46 = vpop.permute.xlu0 %825  ;;  %4303 = vmatpush3.bf16.msra.mxu0 %v4938_v62  ;;  %v5711_v50 = vpack.c.bf16 %v1026_v6, %v1019_v56  ;;  %v5715_v54 = vsub.f32 %v848_v38, %v902_v9 }
  0xa4   :  { %v849_v42 = vsel %vm837_vm5, %v826_v46, %v828_v32  ;;  %4304 = vmatprep.subr.bf16.mxu0 %v6427_v24  ;;  %v965_v32 = vand.u32 4294901760, %v964_v47 }
  0xa5   :  { %v905_v53 = vand.u32 4294901760, %v849_v42  ;;  %v1033_v8 = vand.u32 4294901760, %v5715_v54 }
  0xa7   :  { %v5717_v31 = vsub.f32 %v849_v42, %v905_v53  ;;  %v689_v3 = vpop.permute.xlu1 %688  ;;  %v687_v1 = vpop.permute.xlu0 %686  ;;  %v5719_v62 = vpack.c.bf16 %v905_v53, %v902_v9  ;;  %4306 = vmatpush3.bf16.msra.mxu0 %v4989_v15  ;;  %v972_v9 = vand.u32 4294901760, %v971_v55 }
  0xa8   :  { %v691_v19 = vsel %vm690_vm6, %v687_v1, %v689_v3  ;;  %4307 = vmatprep.subr.bf16.mxu0 %v6427_v24  ;;  %v978_v1 = vsub.f32 %v5571_v23, %v977_v36  ;;  %v986_v36 = vand.u32 4294901760, %v985_v63  ;;  %v1000_v63 = vand.u32 4294901760, %v999_v29 }
  0xa9   :  { %v1040_v34 = vand.u32 4294901760, %v5717_v31  ;;  %v866_v49 = vsel %vm865_vm7, %v691_v19, 0  ;;  %4330 = vmatpush3.bf16.msra.mxu1 %v5719_v62  ;;  %v993_v29 = vand.u32 4294901760, %v992_v25 }
  0xaa   :  { %v5727_v16 = vand.u32 4294901760, %v866_v49  ;;  %4331 = vmatprep.subr.bf16.mxu1 %v6427_v24  ;;  %v979_v58 = vand.u32 4294901760, %v978_v1 }
  0xab   :  { %v836_v57 = vpop.permute.xlu1 %835  ;;  %v834_v40 = vpop.permute.xlu0 %833  ;;  %4309 = vmatpush3.bf16.msra.mxu0 %v5026_v30  ;;  %v5735_v15 = vpack.c.bf16 %v1040_v34, %v1033_v8 }
  0xac   :  { %v5738_v59 = vsub.f32 %v866_v49, %v5727_v16  ;;  %v851_v4 = vsel %vm837_vm5, %v834_v40, %v836_v57  ;;  %4310 = vmatprep.subr.bf16.mxu0 %v6427_v24 }
  0xad   :  { %v869_v11 = vsel %vm868_vm8, %v851_v4, 0 }
  0xae   :  { %v911_v30 = vand.u32 4294901760, %v869_v11  ;;  %v6421_v33 = vand.u32 4294901760, %v5738_v59 }
  0xaf   :  { %v832_v52 = vpop.permute.xlu1 %831  ;;  %v830_v12 = vpop.permute.xlu0 %829  ;;  %4312 = vmatpush3.bf16.msra.mxu0 %v5079_v43 }
  0xb0   :  { %v850_v41 = vsel %vm837_vm5, %v830_v12, %v832_v52  ;;  %4439 = vmatprep.subr.bf16.mxu0 %v6427_v24  ;;  %v5753_v20 = vsub.f32 %v869_v11, %v911_v30  ;;  %v953_v2 = vsub.f32 %v5738_v59, %v6421_v33 }
  0xb1   :  { %v908_v38 = vand.u32 4294901760, %v850_v41 }
  0xb2   :  { %3627 = vmatmul.mubr.f32.vlgmr.msra.gmra.mrb[0].mxu0 %v5017_v28  ;;  %v6424_v19 = vand.u32 4294901760, %v5753_v20  ;;  %v954_v11 = vand.u32 4294901760, %v953_v2 }
  0xb3   :  { %v5762_v43 = vsub.f32 %v850_v41, %v908_v38  ;;  %v1567_v46 = vpop.permute.xlu1 %1566  ;;  %v5764_v42 = vpack.c.bf16 %v911_v30, %v908_v38  ;;  %v1565_v53 = vpop.permute.xlu0 %1564  ;;  %3843 = vmatprep.mubr.msk.f32.mxu0 %vm4770_vm2, %v6422_v18  ;;  %v4335_v30 = vpack.c.bf16 %v972_v9, %v965_v32  ;;  %v1013_v9 = vsub.f32 %v5666_v7, %v1012_v13 }
  0xb4   :  { %v1613_v3 = vand.u32 4294901760, %v1567_v46  ;;  %v1610_v28 = vand.u32 4294901760, %v1565_v53  ;;  %v1006_v13 = vsub.f32 %v5658_v26, %v1005_v61  ;;  %v4341_v61 = vpack.c.bf16 %v1000_v63, %v993_v29 }
  0xb5   :  { %v1047_v49 = vand.u32 4294901760, %v5762_v43  ;;  %4333 = vmatpush3.bf16.msra.mxu1 %v5764_v42  ;;  %v1014_v33 = vand.u32 4294901760, %v1013_v9 }
  0xb6   :  { %v5777_v57 = vsub.f32 %v1567_v46, %v1613_v3  ;;  %v5779_v40 = vpack.c.bf16 %v1613_v3, %v1610_v28  ;;  %v5781_v4 = vsub.f32 %v1565_v53, %v1610_v28  ;;  %4334 = vmatprep.subr.bf16.mxu1 %v6427_v24 }
  0xb7   :  { %v2361_v55 = vpop.permute.xlu1 %2360  ;;  %v2359_v47 = vpop.permute.xlu0 %2358  ;;  %v5791_v52 = vpack.c.bf16 %v6424_v19, %v1047_v49 }
  0xb8   :  { %v1708_v12 = vand.u32 4294901760, %v5777_v57  ;;  %v1701_v41 = vand.u32 4294901760, %v5781_v4  ;;  %3658 = vmatmul.mubr.f32.vlgmr.msra.gmra.mrb[0].mxu1 %v954_v11  ;;  %v2415_v2 = vsel %vm2414_vm9, %v2359_v47, %v2361_v55  ;;  %4441 = vmatpush3.bf16.msra.mxu0 %v5779_v40  ;;  %v4338_v11 = vpack.c.bf16 %v986_v36, %v979_v58 }
  0xb9   :  { %4336 = vmatpush3.bf16.msra.mxu1 %v4335_v30  ;;  %v2447_v32 = vand.u32 4294901760, %v2415_v2  ;;  %3688 = vmatprep.mubr.msk.f32.mxu1 %vm4770_vm2, %v6422_v18  ;;  %v1007_v36 = vand.u32 4294901760, %v1006_v13 }
  0xba   :  { %v1709_v46 = vsub.f32 %v5777_v57, %v1708_v12  ;;  %v1702_v53 = vsub.f32 %v5781_v4, %v1701_v41  ;;  %4337 = vmatprep.subr.bf16.mxu1 %v6427_v24  ;;  %4442 = vmatprep.subr.bf16.mxu0 %v6427_v24  ;;  %v5808_v3 = vpack.c.bf16 %v1708_v12, %v1701_v41 }
  0xbb   :  { %v5813_v28 = vsub.f32 %v2415_v2, %v2447_v32  ;;  %v2365_v1 = vpop.permute.xlu1 %2364  ;;  %v2363_v55 = vpop.permute.xlu0 %2362  ;;  %v1027_v12 = vsub.f32 %v5695_v39, %v1026_v6  ;;  %v1020_v6 = vsub.f32 %v5693_v27, %v1019_v56  ;;  %v4344_v29 = vpack.c.bf16 %v1014_v33, %v1007_v36 }
  0xbc   :  { %6452 = vst [vmem:[#allocation5_spill] sm:$0xff] %v5808_v3  ;;  %v1710_v30 = vand.u32 4294901760, %v1709_v46  ;;  %v1703_v47 = vand.u32 4294901760, %v1702_v53  ;;  %v2416_v38 = vsel %vm2414_vm9, %v2363_v55, %v2365_v1  ;;  %v1034_v56 = vsub.f32 %v5715_v54, %v1033_v8 }
  0xbd   :  { %6453 = vst [vmem:[#allocation6_spill] sm:$0xff] %v5813_v28  ;;  %v2538_v41 = vand.u32 4294901760, %v5813_v28  ;;  %4339 = vmatpush3.bf16.msra.mxu1 %v4338_v11  ;;  %v2450_v18 = vand.u32 4294901760, %v2416_v38  ;;  %v1028_v55 = vand.u32 4294901760, %v1027_v12 }
  0xbe   :  { %4340 = vmatprep.subr.bf16.mxu1 %v6427_v24  ;;  %v5821_v2 = vpack.c.bf16 %v1710_v30, %v1703_v47 }
  0xbf   :  { %v2539_v25 = vsub.f32 %v5813_v28, %v2538_v41  ;;  %v5824_v58 = vpack.c.bf16 %v2450_v18, %v2447_v32  ;;  %v5826_v46 = vsub.f32 %v2416_v38, %v2450_v18  ;;  %v1571_v9 = vpop.permute.xlu1 %1570  ;;  %v1569_v53 = vpop.permute.xlu0 %1568  ;;  %v1041_v18 = vsub.f32 %v5717_v31, %v1040_v34 }
  0xc0   :  { %v1619_v1 = vand.u32 4294901760, %v1571_v9  ;;  %v1616_v11 = vand.u32 4294901760, %v1569_v53 }
  0xc1   :  { %6454 = vst [vmem:[#allocation7_spill] sm:$0xff] %v5826_v46  ;;  %v2545_v63 = vand.u32 4294901760, %v5826_v46  ;;  %4342 = vmatpush3.bf16.msra.mxu1 %v4341_v61  ;;  %v2540_v47 = vand.u32 4294901760, %v2539_v25  ;;  %v1042_v13 = vand.u32 4294901760, %v1041_v18  ;;  %v1035_v18 = vand.u32 4294901760, %v1034_v56 }
  0xc2   :  { %v5837_v38 = vsub.f32 %v1571_v9, %v1619_v1  ;;  %v5839_v32 = vpack.c.bf16 %v1619_v1, %v1616_v11  ;;  %v5841_v30 = vsub.f32 %v1569_v53, %v1616_v11  ;;  %4343 = vmatprep.subr.bf16.mxu1 %v6427_v24  ;;  %v1021_v11 = vand.u32 4294901760, %v1020_v6 }
  0xc3   :  { %v2546_v12 = vsub.f32 %v5826_v46, %v2545_v63  ;;  %v2369_v33 = vpop.permute.xlu1 %2368  ;;  %v2367_v61 = vpop.permute.xlu0 %2366  ;;  %v5848_v36 = vpack.c.bf16 %v2545_v63, %v2538_v41 }
  0xc4   :  { %v1722_v34 = vand.u32 4294901760, %v5837_v38  ;;  %v1715_v9 = vand.u32 4294901760, %v5841_v30  ;;  %v2417_v1 = vsel %vm2414_vm9, %v2367_v61, %v2369_v33  ;;  %4444 = vmatpush3.bf16.msra.mxu0 %v5839_v32  ;;  %v1048_v33 = vsub.f32 %v5762_v43, %v1047_v49 }
  0xc5   :  { %6455 = vst [vmem:[#allocation8_spill] sm:$0xff] %v5848_v36  ;;  %v2547_v8 = vand.u32 4294901760, %v2546_v12  ;;  %4345 = vmatpush3.bf16.msra.mxu1 %v4344_v29  ;;  %v2453_v25 = vand.u32 4294901760, %v2417_v1  ;;  %4445 = vmatprep.subr.bf16.mxu0 %v6427_v24  ;;  %v4347_v29 = vpack.c.bf16 %v1028_v55, %v1021_v11 }
  0xc6   :  { %v1723_v41 = vsub.f32 %v5837_v38, %v1722_v34  ;;  %v1716_v63 = vsub.f32 %v5841_v30, %v1715_v9  ;;  %4346 = vmatprep.subr.bf16.mxu1 %v6427_v24  ;;  %v5860_v19 = vpack.c.bf16 %v1722_v34, %v1715_v9  ;;  %v6459_v24 = vand.u32 4294901760, %v5753_v20 }
  0xc7   :  { %v5865_v61 = vsub.f32 %v2417_v1, %v2453_v25  ;;  %v2373_v6 = vpop.permute.xlu1 %2372  ;;  %v2371_v12 = vpop.permute.xlu0 %2370  ;;  %v5867_v53 = vpack.c.bf16 %v2547_v8, %v2540_v47  ;;  %v6460_v1 = vmov 0.0|0.0   ;;  %v1049_v47 = vand.u32 4294901760, %v1048_v33 }
  0xc8   :  { %6456 = vst [vmem:[#allocation9_spill] sm:$0xff] %v5860_v19  ;;  %v1724_v36 = vand.u32 4294901760, %v1723_v41  ;;  %v1717_v28 = vand.u32 4294901760, %v1716_v63  ;;  %v2418_v46 = vsel %vm2414_vm9, %v2371_v12, %v2373_v6  ;;  %v1055_v34 = vsub.f32 %v5753_v20, %v6459_v24 }
  0xc9   :  { %6457 = vst [vmem:[#allocation10_spill] sm:$0xff] %v5865_v61  ;;  %6458 = vst [vmem:[#allocation11_spill] sm:$0xff] %v5867_v53  ;;  %v2552_v9 = vand.u32 4294901760, %v5865_v61  ;;  %4348 = vmatpush3.bf16.msra.mxu1 %v4347_v29  ;;  %v2456_v49 = vand.u32 4294901760, %v2418_v46  ;;  %v4350_v19 = vpack.c.bf16 %v1042_v13, %v1035_v18 }
  0xca   :  { %4349 = vmatprep.subr.bf16.mxu1 %v6460_v1  ;;  %v5875_v55 = vpack.c.bf16 %v1724_v36, %v1717_v28  ;;  %v1056_v12 = vand.u32 4294901760, %v1055_v34 }
  0xcb   :  { %v2553_v56 = vsub.f32 %v5865_v61, %v2552_v9  ;;  %v5878_v11 = vpack.c.bf16 %v2456_v49, %v2453_v25  ;;  %v5880_v8 = vsub.f32 %v2418_v46, %v2456_v49  ;;  %v1575_v41 = vpop.permute.xlu1 %1574  ;;  %v1573_v63 = vpop.permute.xlu0 %1572  ;;  %v4368_v61 = vpack.c.bf16 %v5695_v39, %v5693_v27 }
  0xcc   :  { %v1625_v6 = vand.u32 4294901760, %v1575_v41  ;;  %v1622_v24 = vand.u32 4294901760, %v1573_v63  ;;  %v4353_v18 = vpack.c.bf16 %v1056_v12, %v1049_v47  ;;  %v4356_v12 = vpack.c.bf16 %v5530_v37, %v5532_v45 }
  0xcd   :  { %6461 = vst [vmem:[#allocation12_spill] sm:$0xff] %v5880_v8  ;;  %v2559_v29 = vand.u32 4294901760, %v5880_v8  ;;  %4351 = vmatpush3.bf16.msra.mxu1 %v4350_v19  ;;  %v2554_v46 = vand.u32 4294901760, %v2553_v56  ;;  %v4359_v45 = vpack.c.bf16 %v5583_v10, %v5571_v23  ;;  %v4362_v10 = vpack.c.bf16 %v5632_v44, %v5627_v21 }
  0xce   :  { %v5885_v28 = vsub.f32 %v1575_v41, %v1625_v6  ;;  %v5887_v13 = vpack.c.bf16 %v1625_v6, %v1622_v24  ;;  %v5889_v36 = vsub.f32 %v1573_v63, %v1622_v24  ;;  %4352 = vmatprep.subr.bf16.mxu1 %v6460_v1  ;;  %v4365_v44 = vpack.c.bf16 %v5666_v7, %v5658_v26 }
  0xcf   :  { %v2560_v25 = vsub.f32 %v5880_v8, %v2559_v29  ;;  %v2377_v33 = vpop.permute.xlu1 %2376  ;;  %v2375_v34 = vpop.permute.xlu0 %2374  ;;  %v5893_v49 = vpack.c.bf16 %v2559_v29, %v2552_v9  ;;  %v4371_v39 = vpack.c.bf16 %v5717_v31, %v5715_v54  ;;  %v4374_v31 = vpack.c.bf16 %v5753_v20, %v5762_v43 }
  0xd0   :  { %v1736_v53 = vand.u32 4294901760, %v5885_v28  ;;  %v1729_v19 = vand.u32 4294901760, %v5889_v36  ;;  %v2419_v63 = vsel %vm2414_vm9, %v2375_v34, %v2377_v33  ;;  %4447 = vmatpush3.bf16.msra.mxu0 %v5887_v13 }
  0xd1   :  { %6462 = vst [vmem:[#allocation13_spill] sm:$0xff] %v5893_v49  ;;  %v2561_v6 = vand.u32 4294901760, %v2560_v25  ;;  %4354 = vmatpush3.bf16.msra.mxu1 %v4353_v18  ;;  %v2459_v56 = vand.u32 4294901760, %v2419_v63  ;;  %4448 = vmatprep.subr.bf16.mxu0 %v6460_v1 }
  0xd2   :  { %v1737_v47 = vsub.f32 %v5885_v28, %v1736_v53  ;;  %v1730_v9 = vsub.f32 %v5889_v36, %v1729_v19  ;;  %4355 = vmatprep.subr.bf16.mxu1 %v6460_v1  ;;  %v5905_v24 = vpack.c.bf16 %v1736_v53, %v1729_v19  ;;  %v6466_v19 = vmov 0.0  }
  0xd3   :  { %v5909_v29 = vsub.f32 %v2419_v63, %v2459_v56  ;;  %v2381_v33 = vpop.permute.xlu1 %2380  ;;  %v2379_v34 = vpop.permute.xlu0 %2378  ;;  %v5911_v25 = vpack.c.bf16 %v2561_v6, %v2554_v46 }
  0xd4   :  { %6463 = vst [vmem:[#allocation14_spill] sm:$0xff] %v5905_v24  ;;  %v1738_v18 = vand.u32 4294901760, %v1737_v47  ;;  %v1731_v3 = vand.u32 4294901760, %v1730_v9  ;;  %3689 = vmatmul.mubr.f32.vlgmr.msra.gmra.mrb[0].mxu1 %v5727_v16  ;;  %v2420_v41 = vsel %vm2414_vm9, %v2379_v34, %v2381_v33 }
  0xd5   :  { %6464 = vst [vmem:[#allocation15_spill] sm:$0xff] %v5909_v29  ;;  %6465 = vst [vmem:[#allocation16_spill] sm:$0xff] %v5911_v25  ;;  %v2566_v49 = vand.u32 4294901760, %v5909_v29  ;;  %4357 = vmatpush3.bf16.msra.mxu1 %v4356_v12  ;;  %v2462_v53 = vand.u32 4294901760, %v2420_v41  ;;  %3719 = vmatprep.mubr.msk.f32.mxu1 %vm4770_vm2, %v6466_v19 }
  0xd6   :  { %4358 = vmatprep.subr.bf16.mxu1 %v6460_v1  ;;  %v5919_v37 = vpack.c.bf16 %v1738_v18, %v1731_v3 }
  0xd7   :  { %v2567_v46 = vsub.f32 %v5909_v29, %v2566_v49  ;;  %v5924_v63 = vpack.c.bf16 %v2462_v53, %v2459_v56  ;;  %v5926_v6 = vsub.f32 %v2420_v41, %v2462_v53  ;;  %v1579_v47 = vpop.permute.xlu1 %1578  ;;  %v1577_v9 = vpop.permute.xlu0 %1576 }
  0xd8   :  { %v1631_v12 = vand.u32 4294901760, %v1579_v47  ;;  %v1628_v33 = vand.u32 4294901760, %v1577_v9 }
  0xd9   :  { %6467 = vst [vmem:[#allocation17_spill] sm:$0xff] %v5926_v6  ;;  %v2573_v34 = vand.u32 4294901760, %v5926_v6  ;;  %4360 = vmatpush3.bf16.msra.mxu1 %v4359_v45  ;;  %v2568_v41 = vand.u32 4294901760, %v2567_v46 }
  0xda   :  { %v5931_v3 = vsub.f32 %v1579_v47, %v1631_v12  ;;  %v5933_v18 = vpack.c.bf16 %v1631_v12, %v1628_v33  ;;  %v5935_v23 = vsub.f32 %v1577_v9, %v1628_v33  ;;  %4361 = vmatprep.subr.bf16.mxu1 %v6460_v1 }
  0xdb   :  { %v2574_v56 = vsub.f32 %v5926_v6, %v2573_v34  ;;  %v2385_v53 = vpop.permute.xlu1 %2384  ;;  %v2383_v8 = vpop.permute.xlu0 %2382  ;;  %v5941_v24 = vpack.c.bf16 %v2573_v34, %v2566_v49 }
  0xdc   :  { %v6432_v45 = vand.u32 4294901760, %v5931_v3  ;;  %v6431_v47 = vand.u32 4294901760, %v5935_v23  ;;  %v2421_v12 = vsel %vm2414_vm9, %v2383_v8, %v2385_v53  ;;  %4450 = vmatpush3.bf16.msra.mxu0 %v5933_v18 }
  0xdd   :  { %6468 = vst [vmem:[#allocation18_spill] sm:$0xff] %v5941_v24  ;;  %v2575_v9 = vand.u32 4294901760, %v2574_v56  ;;  %4363 = vmatpush3.bf16.msra.mxu1 %v4362_v10  ;;  %v2465_v33 = vand.u32 4294901760, %v2421_v12  ;;  %4451 = vmatprep.subr.bf16.mxu0 %v6460_v1 }
  0xde   :  { %4364 = vmatprep.subr.bf16.mxu1 %v6460_v1  ;;  %v5953_v21 = vpack.c.bf16 %v6432_v45, %v6431_v47 }
  0xdf   :  { %v5957_v49 = vsub.f32 %v2421_v12, %v2465_v33  ;;  %v2389_v8 = vpop.permute.xlu1 %2388  ;;  %v2387_v46 = vpop.permute.xlu0 %2386  ;;  %v5959_v34 = vpack.c.bf16 %v2575_v9, %v2568_v41 }
  0xe0   :  { %6469 = vst [vmem:[#allocation19_spill] sm:$0xff] %v5953_v21  ;;  %v2422_v10 = vsel %vm2414_vm9, %v2387_v46, %v2389_v8 }
  0xe1   :  { %6470 = vst [vmem:[#allocation20_spill] sm:$0xff] %v5957_v49  ;;  %6471 = vst [vmem:[#allocation21_spill] sm:$0xff] %v5959_v34  ;;  %v2580_v56 = vand.u32 4294901760, %v5957_v49  ;;  %4366 = vmatpush3.bf16.msra.mxu1 %v4365_v44  ;;  %v2468_v53 = vand.u32 4294901760, %v2422_v10 }
  0xe2   :  { %4367 = vmatprep.subr.bf16.mxu1 %v6460_v1 }
  0xe3   :  { %v2581_v47 = vsub.f32 %v5957_v49, %v2580_v56  ;;  %v5967_v26 = vpack.c.bf16 %v2468_v53, %v2465_v33  ;;  %v5969_v7 = vsub.f32 %v2422_v10, %v2468_v53  ;;  %v1583_v12 = vpop.permute.xlu1 %1582  ;;  %v1581_v41 = vpop.permute.xlu0 %1580 }
  0xe4   :  { %v1637_v9 = vand.u32 4294901760, %v1583_v12  ;;  %v1634_v45 = vand.u32 4294901760, %v1581_v41 }
  0xe5   :  { %6472 = vst [vmem:[#allocation22_spill] sm:$0xff] %v5969_v7  ;;  %v2587_v8 = vand.u32 4294901760, %v5969_v7  ;;  %4369 = vmatpush3.bf16.msra.mxu1 %v4368_v61  ;;  %v2582_v33 = vand.u32 4294901760, %v2581_v47 }
  0xe6   :  { %v5974_v46 = vsub.f32 %v1583_v12, %v1637_v9  ;;  %v5976_v24 = vpack.c.bf16 %v1637_v9, %v1634_v45  ;;  %v5978_v27 = vsub.f32 %v1581_v41, %v1634_v45  ;;  %4370 = vmatprep.subr.bf16.mxu1 %v6460_v1 }
  0xe7   :  { %v2588_v10 = vsub.f32 %v5969_v7, %v2587_v8  ;;  %v2393_v53 = vpop.permute.xlu1 %2392  ;;  %v2391_v29 = vpop.permute.xlu0 %2390  ;;  %v5984_v6 = vpack.c.bf16 %v2587_v8, %v2580_v56 }
  0xe8   :  { %v6436_v61 = vand.u32 4294901760, %v5974_v46  ;;  %v6435_v12 = vand.u32 4294901760, %v5978_v27  ;;  %v2423_v9 = vsel %vm2414_vm9, %v2391_v29, %v2393_v53  ;;  %4453 = vmatpush3.bf16.msra.mxu0 %v5976_v24 }
  0xe9   :  { %6473 = vst [vmem:[#allocation23_spill] sm:$0xff] %v5984_v6  ;;  %v2589_v45 = vand.u32 4294901760, %v2588_v10  ;;  %4372 = vmatpush3.bf16.msra.mxu1 %v4371_v39  ;;  %v2471_v41 = vand.u32 4294901760, %v2423_v9  ;;  %4454 = vmatprep.subr.bf16.mxu0 %v6460_v1 }
  0xea   :  { %4373 = vmatprep.subr.bf16.mxu1 %v6460_v1  ;;  %v5996_v54 = vpack.c.bf16 %v6436_v61, %v6435_v12 }
  0xeb   :  { %v6000_v47 = vsub.f32 %v2423_v9, %v2471_v41  ;;  %v2397_v29 = vpop.permute.xlu1 %2396  ;;  %v2395_v56 = vpop.permute.xlu0 %2394  ;;  %v6002_v8 = vpack.c.bf16 %v2589_v45, %v2582_v33 }
  0xec   :  { %6474 = vst [vmem:[#allocation24_spill] sm:$0xff] %v5996_v54  ;;  %v2424_v39 = vsel %vm2414_vm9, %v2395_v56, %v2397_v29 }
  0xed   :  { %6475 = vst [vmem:[#allocation25_spill] sm:$0xff] %v6000_v47  ;;  %6476 = vst [vmem:[#allocation26_spill] sm:$0xff] %v6002_v8  ;;  %v2594_v10 = vand.u32 4294901760, %v6000_v47  ;;  %4375 = vmatpush3.bf16.msra.mxu1 %v4374_v31  ;;  %v2474_v53 = vand.u32 4294901760, %v2424_v39 }
  0xee   :  { %4376 = vmatprep.subr.bf16.mxu1 %v6460_v1 }
  0xef   :  { %v2595_v44 = vsub.f32 %v6000_v47, %v2594_v10  ;;  %v6008_v12 = vpack.c.bf16 %v2474_v53, %v2471_v41  ;;  %v6010_v61 = vsub.f32 %v2424_v39, %v2474_v53  ;;  %v1516_v20 = vpop.permute.xlu1 %1515  ;;  %v1514_v43 = vpop.permute.xlu0 %1513 }
  0xf0   :  { %3720 = vmatmul.mubr.f32.vlgmr.msra.gmra.mrb[0].mxu1 %v5738_v59  ;;  %v1518_v6 = vsel %vm1517_vm10, %v1514_v43, %v1516_v20 }
  0xf1   :  { %6477 = vst [vmem:[#allocation27_spill] sm:$0xff] %v6010_v61  ;;  %v2601_v33 = vand.u32 4294901760, %v6010_v61  ;;  %4378 = vmatpush3.bf16.msra.mxu1 %v5534_v51  ;;  %3750 = vmatprep.mubr.msk.f32.mxu1 %vm4770_vm2, %v6466_v19  ;;  %v2596_v45 = vand.u32 4294901760, %v2595_v44 }
  0xf2   :  { %4379 = vmatprep.subr.bf16.mxu1 %v6460_v1 }
  0xf3   :  { %v2602_v41 = vsub.f32 %v6010_v61, %v2601_v33  ;;  %v1587_v31 = vpop.permute.xlu1 %1586  ;;  %v6021_v29 = vpack.c.bf16 %v2601_v33, %v2594_v10  ;;  %v1605_v10 = vsel %vm865_vm7, %v1518_v6, 0 }
  0xf4   :  { %v1643_v56 = vand.u32 4294901760, %v1587_v31  ;;  %v1585_v39 = vpop.permute.xlu0 %1584 }
  0xf5   :  { %6478 = vst [vmem:[#allocation28_spill] sm:$0xff] %v6021_v29  ;;  %v2603_v53 = vand.u32 4294901760, %v2602_v41  ;;  %4381 = vmatpush3.bf16.msra.mxu1 %v5585_v48  ;;  %v1640_v9 = vand.u32 4294901760, %v1585_v39 }
  0xf6   :  { %v6024_v47 = vsub.f32 %v1587_v31, %v1643_v56  ;;  %4382 = vmatprep.subr.bf16.mxu1 %v6460_v1 }
  0xf7   :  { %v6027_v49 = vpack.c.bf16 %v1643_v56, %v1640_v9  ;;  %v6029_v7 = vsub.f32 %v1585_v39, %v1640_v9  ;;  %v2401_v44 = vpop.permute.xlu1 %2400  ;;  %v6031_v61 = vpack.c.bf16 %v2603_v53, %v2596_v45  ;;  %v6041_v9 = vand.u32 4294901760, %v1605_v10 }
  0xf8   :  { %v2399_v33 = vpop.permute.xlu0 %2398  ;;  %v6442_v41 = vand.u32 4294901760, %v6024_v47 }
  0xf9   :  { %6479 = vst [vmem:[#allocation29_spill] sm:$0xff] %v6027_v49  ;;  %6480 = vst [vmem:[#allocation30_spill] sm:$0xff] %v6031_v61  ;;  %v6441_v20 = vand.u32 4294901760, %v6029_v7  ;;  %4384 = vmatpush3.bf16.msra.mxu1 %v5634_v60  ;;  %v2425_v43 = vsel %vm2414_vm9, %v2399_v33, %v2401_v44  ;;  %4456 = vmatpush3.bf16.msra.mxu0 %v6027_v49  ;;  %v6056_v29 = vsub.f32 %v1605_v10, %v6041_v9 }
  0xfa   :  { %v2477_v31 = vand.u32 4294901760, %v2425_v43  ;;  %4385 = vmatprep.subr.bf16.mxu1 %v6460_v1  ;;  %4457 = vmatprep.subr.bf16.mxu0 %v6460_v1 }
  0xfb   :  { %v2405_v45 = vpop.permute.xlu1 %2404  ;;  %v6047_v6 = vpack.c.bf16 %v6442_v41, %v6441_v20  ;;  %v6447_v10 = vand.u32 4294901760, %v6056_v29 }
  0xfc   :  { %v6049_v56 = vsub.f32 %v2425_v43, %v2477_v31  ;;  %v2403_v39 = vpop.permute.xlu0 %2402 }
  0xfd   :  { %6481 = vst [vmem:[#allocation31_spill] sm:$0xff] %v6047_v6  ;;  %4387 = vmatpush3.bf16.msra.mxu1 %v5668_v35  ;;  %v2426_v53 = vsel %vm2414_vm9, %v2403_v39, %v2405_v45 }
  0xfe   :  { %6482 = vst [vmem:[#allocation32_spill] sm:$0xff] %v6049_v56  ;;  %v2608_v44 = vand.u32 4294901760, %v6049_v56  ;;  %v2480_v33 = vand.u32 4294901760, %v2426_v53  ;;  %4388 = vmatprep.subr.bf16.mxu1 %v6460_v1 }
  0xff   :  { %v2267_v54 = vpop.permute.xlu1 %2266 }
 0x100   :  { %v2609_v20 = vsub.f32 %v6049_v56, %v2608_v44  ;;  %v6059_v41 = vpack.c.bf16 %v2480_v33, %v2477_v31  ;;  %v6061_v43 = vsub.f32 %v2426_v53, %v2480_v33  ;;  %v2265_v6 = vpop.permute.xlu0 %2264  ;;  %v1691_v56 = vsub.f32 %v6056_v29, %v6447_v10 }
 0x101   :  { %4390 = vmatpush3.bf16.msra.mxu1 %v5697_v0  ;;  %v6064_v45 = vsel %vm2268_vm11, %v2265_v6, %v2267_v54 }
 0x102   :  { %6483 = vst [vmem:[#allocation33_spill] sm:$0xff] %v6061_v43  ;;  %v2615_v39 = vand.u32 4294901760, %v6061_v43  ;;  %4391 = vmatprep.subr.bf16.mxu1 %v6460_v1  ;;  %v2610_v8 = vand.u32 4294901760, %v2609_v20  ;;  %v1692_v10 = vand.u32 4294901760, %v1691_v56 }
 0x103   :  { %v2411_v21 = vpop.permute.xlu1 %2410 }
 0x104   :  { %v2616_v31 = vsub.f32 %v6061_v43, %v2615_v39  ;;  %v1591_v53 = vpop.permute.xlu0 %1590  ;;  %v6072_v33 = vpack.c.bf16 %v2615_v39, %v2608_v44 }
 0x105   :  { %4393 = vmatpush3.bf16.msra.mxu1 %v5719_v62  ;;  %v1607_v54 = vsel %vm868_vm8, %v1591_v53, 0 }
 0x106   :  { %6484 = vst [vmem:[#allocation34_spill] sm:$0xff] %v6072_v33  ;;  %v2617_v6 = vand.u32 4294901760, %v2616_v31  ;;  %v1649_v34 = vand.u32 4294901760, %v1607_v54  ;;  %4394 = vmatprep.subr.bf16.mxu1 %v6460_v1 }
 0x107   :  { %v1589_v61 = vpop.permute.xlu1 %1588 }
 0x108   :  { %v6080_v25 = vsub.f32 %v1607_v54, %v1649_v34  ;;  %v1646_v20 = vand.u32 4294901760, %v1589_v61  ;;  %v2413_v43 = vpop.permute.xlu0 %2412  ;;  %v6082_v49 = vpack.c.bf16 %v2617_v6, %v2610_v8 }
 0x109   :  { %4396 = vmatpush3.bf16.msra.mxu1 %v5764_v42  ;;  %v2428_v44 = vsel %vm2414_vm9, %v2411_v21, %v2413_v43  ;;  %v6489_v43 = vand.u32 4294901760, %v5935_v23 }
 0x10a   :  { %6485 = vst [vmem:[#allocation35_spill] sm:$0xff] %v6082_v49  ;;  %v6086_v39 = vpack.c.bf16 %v1649_v34, %v1646_v20  ;;  %v6088_v31 = vsub.f32 %v1589_v61, %v1646_v20  ;;  %4397 = vmatprep.subr.bf16.mxu1 %v6460_v1  ;;  %v6092_v53 = vsel %vm868_vm8, %v2428_v44, 0  ;;  %v1792_v8 = vand.u32 4294901760, %v6080_v25 }
 0x10b   :  { %v6448_v54 = vand.u32 4294901760, %v6092_v53  ;;  %v2409_v33 = vpop.permute.xlu1 %2408  ;;  %v6486_v49 = vand.u32 4294901760, %v5738_v59 }
 0x10c   :  { %v1785_v6 = vand.u32 4294901760, %v6088_v31  ;;  %4459 = vmatpush3.bf16.msra.mxu0 %v6086_v39  ;;  %v2407_v21 = vpop.permute.xlu0 %2406 }
 0x10d   :  { %3751 = vmatmul.mubr.f32.vlgmr.msra.gmra.mrb[0].mxu1 %v6486_v49  ;;  %4460 = vmatprep.subr.bf16.mxu0 %v6460_v1  ;;  %v6103_v34 = vsel %vm2414_vm9, %v2407_v21, %v2409_v33  ;;  %v6111_v59 = vsub.f32 %v6092_v53, %v6448_v54  ;;  %v1744_v33 = vsub.f32 %v5935_v23, %v6489_v43 }
 0x10e   :  { %4399 = vmatpush3.bf16.msra.mxu1 %v5567_v14  ;;  %3781 = vmatprep.mubr.msk.f32.mxu1 %vm4770_vm2, %v6466_v19  ;;  %v6449_v49 = vand.u32 4294901760, %v6103_v34  ;;  %v6114_v61 = vpack.c.bf16 %v1792_v8, %v1785_v6  ;;  %v6488_v14 = vand.u32 4294901760, %v5931_v3 }
 0x10f   :  { %4400 = vmatprep.subr.bf16.mxu1 %v6460_v1  ;;  %3844 = vmatmul.mubr.f32.vlgmr.msra.gmra.mrb[2].mxu0 %v1692_v10  ;;  %v6451_v10 = vand.u32 4294901760, %v6111_v59 }
 0x110   :  { %6487 = vst [vmem:[#allocation36_spill] sm:$0xff] %v6114_v61  ;;  %v1751_v56 = vsub.f32 %v5931_v3, %v6488_v14  ;;  %4462 = vmatpush3.bf16.msra.mxu0 %v5821_v2  ;;  %3874 = vmatprep.mubr.msk.f32.mxu0 %vm4770_vm2, %v6466_v19  ;;  %v6128_v20 = vsub.f32 %v6103_v34, %v6449_v49  ;;  %v6490_v2 = vand.u32 4294901760, %v5974_v46  ;;  %v6491_v14 = vand.u32 4294901760, %v5978_v27 }
 0x111   :  { %4463 = vmatprep.subr.bf16.mxu0 %v6460_v1  ;;  %v1745_v49 = vand.u32 4294901760, %v1744_v33 }
 0x112   :  { %4402 = vmatpush3.bf16.msra.mxu1 %v5617_v5  ;;  %v6450_v44 = vand.u32 4294901760, %v6128_v20  ;;  %v1765_v21 = vsub.f32 %v5974_v46, %v6490_v2  ;;  %v1758_v43 = vsub.f32 %v5978_v27, %v6491_v14  ;;  %v1752_v54 = vand.u32 4294901760, %v1751_v56 }
 0x113   :  { %4403 = vmatprep.subr.bf16.mxu1 %v6460_v1  ;;  %v6492_v14 = vand.u32 4294901760, %v6024_v47 }
 0x114   :  { %4465 = vmatpush3.bf16.msra.mxu0 %v5875_v55  ;;  %v6146_v5 = vpack.c.bf16 %v6451_v10, %v6450_v44  ;;  %v1766_v2 = vand.u32 4294901760, %v1765_v21  ;;  %v1759_v61 = vand.u32 4294901760, %v1758_v43  ;;  %v6493_v55 = vand.u32 4294901760, %v6029_v7 }
 0x115   :  { %4466 = vmatprep.subr.bf16.mxu0 %v6460_v1  ;;  %v1779_v56 = vsub.f32 %v6024_v47, %v6492_v14  ;;  %v4470_v44 = vpack.c.bf16 %v1752_v54, %v1745_v49  ;;  %v1793_v10 = vsub.f32 %v6080_v25, %v1792_v8  ;;  %v1786_v14 = vsub.f32 %v6088_v31, %v1785_v6  ;;  %v6511_v49 = vld [vmem:[#allocation30_spill] sm:$0xff] }
 0x116   :  { %4405 = vmatpush3.bf16.msra.mxu1 %v5654_v22  ;;  %v1772_v33 = vsub.f32 %v6029_v7, %v6493_v55  ;;  %v4473_v22 = vpack.c.bf16 %v1766_v2, %v1759_v61  ;;  %v6513_v2 = vld [vmem:[#allocation35_spill] sm:$0xff] }
 0x117   :  { %4406 = vmatprep.subr.bf16.mxu1 %v6460_v1  ;;  %v1780_v21 = vand.u32 4294901760, %v1779_v56  ;;  %v6514_v55 = vld [vmem:[#allocation31_spill] sm:$0xff] }
 0x118   :  { %4468 = vmatpush3.bf16.msra.mxu0 %v5919_v37  ;;  %v1773_v43 = vand.u32 4294901760, %v1772_v33  ;;  %v1794_v37 = vand.u32 4294901760, %v1793_v10  ;;  %v6515_v33 = vld [vmem:[#allocation36_spill] sm:$0xff] }
 0x119   :  { %4469 = vmatprep.subr.bf16.mxu0 %v6460_v1 }
 0x11a   :  { %4408 = vmatpush3.bf16.msra.mxu1 %v5689_v17  ;;  %v1787_v17 = vand.u32 4294901760, %v1786_v14  ;;  %v4476_v54 = vpack.c.bf16 %v1780_v21, %v1773_v43  ;;  %v6517_v21 = vld [vmem:[#allocation6_spill] sm:$0xff]  ;;  %v6519_v14 = vld [vmem:[#allocation12_spill] sm:$0xff] }
 0x11b   :  { %4409 = vmatprep.subr.bf16.mxu1 %v6460_v1 }
 0x11c   :  { %4471 = vmatpush3.bf16.msra.mxu0 %v4470_v44  ;;  %v4479_v8 = vpack.c.bf16 %v1794_v37, %v1787_v17  ;;  %v6512_v44 = vld [vmem:[#allocation24_spill] sm:$0xff]  ;;  %v6520_v37 = vld [vmem:[#allocation10_spill] sm:$0xff] }
 0x11d   :  { %4472 = vmatprep.subr.bf16.mxu0 %v6460_v1  ;;  %v6521_v17 = vpack.c.bf16 %v6519_v14, %v6520_v37 }
 0x11e   :  { %4411 = vmatpush3.bf16.msra.mxu1 %v5711_v50  ;;  %v6494_v50 = vpack.c.bf16 %v5777_v57, %v5781_v4 }
 0x11f   :  { %4412 = vmatprep.subr.bf16.mxu1 %v6460_v1 }
 0x120   :  { %4474 = vmatpush3.bf16.msra.mxu0 %v4473_v22  ;;  %v6516_v22 = vld [vmem:[#allocation7_spill] sm:$0xff] }
 0x121   :  { %4475 = vmatprep.subr.bf16.mxu0 %v6460_v1  ;;  %v6518_v43 = vpack.c.bf16 %v6516_v22, %v6517_v21 }
 0x122   :  { %4414 = vmatpush3.bf16.msra.mxu1 %v5735_v15  ;;  %v6496_v15 = vpack.c.bf16 %v5885_v28, %v5889_v36  ;;  %v6499_v28 = vld [vmem:[#allocation29_spill] sm:$0xff] }
 0x123   :  { %4415 = vmatprep.subr.bf16.mxu1 %v6460_v1 }
 0x124   :  { %4477 = vmatpush3.bf16.msra.mxu0 %v4476_v54  ;;  %v6522_v54 = vld [vmem:[#allocation17_spill] sm:$0xff] }
 0x125   :  { %4478 = vmatprep.subr.bf16.mxu0 %v6460_v1 }
 0x126   :  { %4417 = vmatpush3.bf16.msra.mxu1 %v5791_v52  ;;  %v6497_v52 = vand.u32 4294901760, %v6103_v34  ;;  %v6510_v34 = vld [vmem:[#allocation19_spill] sm:$0xff] }
 0x127   :  { %4418 = vmatprep.subr.bf16.mxu1 %v6460_v1 }
 0x128   :  { %4480 = vmatpush3.bf16.msra.mxu0 %v4479_v8  ;;  %v6523_v8 = vld [vmem:[#allocation15_spill] sm:$0xff] }
 0x129   :  { %3782 = vmatmul.mubr.f32.vlgmr.msra.gmra.mrb[0].mxu1 %v5727_v16  ;;  %4481 = vmatprep.subr.bf16.mxu0 %v6460_v1 }
 0x12a   :  { %4420 = vmatpush3.bf16.msra.mxu1 %v5534_v51  ;;  %3812 = vmatprep.mubr.msk.f32.mxu1 %vm4770_vm2, %v6466_v19  ;;  %v6495_v51 = vpack.c.bf16 %v5837_v38, %v5841_v30  ;;  %v6498_v38 = vand.u32 4294901760, %v6092_v53  ;;  %v6509_v53 = vand.u32 4294901760, %v6128_v20 }
 0x12b   :  { %4421 = vmatprep.subr.bf16.mxu1 %v6460_v1  ;;  %3875 = vmatmul.mubr.f32.vlgmr.msra.gmra.mrb[2].mxu0 %v6041_v9 }
 0x12c   :  { %4483 = vmatpush3.bf16.msra.mxu0 %v6494_v50  ;;  %3905 = vmatprep.mubr.msk.f32.mxu0 %vm4770_vm2, %v6466_v19  ;;  %v6260_v30 = vpack.c.bf16 %v6498_v38, %v6497_v52  ;;  %v2623_v6 = vsub.f32 %v6128_v20, %v6509_v53  ;;  %v6524_v50 = vpack.c.bf16 %v6522_v54, %v6523_v8 }
 0x12d   :  { %4484 = vmatprep.subr.bf16.mxu0 %v6460_v1 }
 0x12e   :  { %4423 = vmatpush3.bf16.msra.mxu1 %v5585_v48  ;;  %v4491_v48 = vpack.c.bf16 %v5931_v3, %v5935_v23  ;;  %v6501_v3 = vand.u32 4294901760, %v6056_v29  ;;  %v6502_v23 = vld [vmem:[#allocation5_spill] sm:$0xff]  ;;  %v2624_v10 = vand.u32 4294901760, %v2623_v6 }
 0x12f   :  { %4424 = vmatprep.subr.bf16.mxu1 %v6460_v1 }
 0x130   :  { %4486 = vmatpush3.bf16.msra.mxu0 %v6495_v51 }
 0x131   :  { %4487 = vmatprep.subr.bf16.mxu0 %v6460_v1 }
 0x132   :  { %4426 = vmatpush3.bf16.msra.mxu1 %v5634_v60  ;;  %v4494_v60 = vpack.c.bf16 %v5974_v46, %v5978_v27  ;;  %v6504_v46 = vld [vmem:[#allocation9_spill] sm:$0xff] }
 0x133   :  { %4427 = vmatprep.subr.bf16.mxu1 %v6460_v1  ;;  %v6505_v27 = vld [vmem:[#allocation21_spill] sm:$0xff] }
 0x134   :  { %4489 = vmatpush3.bf16.msra.mxu0 %v6496_v15  ;;  %v6525_v15 = vld [vmem:[#allocation22_spill] sm:$0xff] }
 0x135   :  { %4490 = vmatprep.subr.bf16.mxu0 %v6460_v1 }
 0x136   :  { %4429 = vmatpush3.bf16.msra.mxu1 %v5668_v35  ;;  %v4497_v35 = vpack.c.bf16 %v6024_v47, %v6029_v7  ;;  %v6503_v7 = vld [vmem:[#allocation16_spill] sm:$0xff]  ;;  %v6506_v47 = vld [vmem:[#allocation14_spill] sm:$0xff] }
 0x137   :  { %4430 = vmatprep.subr.bf16.mxu1 %v6460_v1 }
 0x138   :  { %4492 = vmatpush3.bf16.msra.mxu0 %v4491_v48  ;;  %v6526_v48 = vld [vmem:[#allocation20_spill] sm:$0xff] }
 0x139   :  { %4493 = vmatprep.subr.bf16.mxu0 %v6460_v1 }
 0x13a   :  { %4432 = vmatpush3.bf16.msra.mxu1 %v5697_v0  ;;  %v4500_v0 = vpack.c.bf16 %v6080_v25, %v6088_v31  ;;  %v6500_v25 = vld [vmem:[#allocation11_spill] sm:$0xff] }
 0x13b   :  { %4433 = vmatprep.subr.bf16.mxu1 %v6460_v1 }
 0x13c   :  { %4495 = vmatpush3.bf16.msra.mxu0 %v4494_v60  ;;  %v6527_v60 = vpack.c.bf16 %v6525_v15, %v6526_v48 }
 0x13d   :  { %4496 = vmatprep.subr.bf16.mxu0 %v6460_v1 }
 0x13e   :  { %4435 = vmatpush3.bf16.msra.mxu1 %v5719_v62  ;;  %v2442_v62 = vsel %vm865_vm7, %v6064_v45, 0  ;;  %v6508_v45 = vand.u32 4294901760, %v6111_v59 }
 0x13f   :  { %4436 = vmatprep.subr.bf16.mxu1 %v6460_v1 }
 0x140   :  { %4498 = vmatpush3.bf16.msra.mxu0 %v4497_v35  ;;  %v2630_v31 = vsub.f32 %v6111_v59, %v6508_v45  ;;  %v6529_v35 = vld [vmem:[#allocation25_spill] sm:$0xff] }
 0x141   :  { %4499 = vmatprep.subr.bf16.mxu0 %v6460_v1 }
 0x142   :  { %4438 = vmatpush3.bf16.msra.mxu1 %v5764_v42  ;;  %v2631_v61 = vand.u32 4294901760, %v2630_v31 }
 0x143   :  { %4565 = vmatprep.subr.bf16.mxu1 %v6460_v1 }
 0x144   :  { %4501 = vmatpush3.bf16.msra.mxu0 %v4500_v0  ;;  %v4605_v56 = vpack.c.bf16 %v2631_v61, %v2624_v10 }
 0x145   :  { %3813 = vmatmul.mubr.f32.vlgmr.msra.gmra.mrb[0].mxu1 %v5727_v16  ;;  %4502 = vmatprep.subr.bf16.mxu0 %v6460_v1  ;;  %v6234_v16 = vand.u32 4294901760, %v2442_v62 }
 0x146   :  { %4567 = vmatpush3.bf16.msra.mxu1 %v5824_v58  ;;  %4029 = vmatprep.mubr.msk.f32.mxu1 %vm4770_vm2, %v6466_v19 }
 0x147   :  { %4568 = vmatprep.subr.bf16.mxu1 %v6460_v1  ;;  %3906 = vmatmul.mubr.f32.vlgmr.msra.gmra.mrb[2].mxu0 %v6056_v29  ;;  %v6241_v42 = vsub.f32 %v2442_v62, %v6234_v16  ;;  %v6507_v29 = vld [vmem:[#allocation26_spill] sm:$0xff]  ;;  %v6532_v62 = vld [vmem:[#allocation32_spill] sm:$0xff] }
 0x148   :  { %4504 = vmatpush3.bf16.msra.mxu0 %v5779_v40  ;;  %3936 = vmatprep.mubr.msk.f32.mxu0 %vm4770_vm2, %v6466_v19 }
 0x149   :  { %4505 = vmatprep.subr.bf16.mxu0 %v6460_v1  ;;  %v2527_v57 = vand.u32 4294901760, %v6241_v42 }
 0x14a   :  { %4570 = vmatpush3.bf16.msra.mxu1 %v5878_v11 }
 0x14b   :  { %4571 = vmatprep.subr.bf16.mxu1 %v6460_v1  ;;  %v2528_v4 = vsub.f32 %v6241_v42, %v2527_v57 }
 0x14c   :  { %4507 = vmatpush3.bf16.msra.mxu0 %v5839_v32 }
 0x14d   :  { %4508 = vmatprep.subr.bf16.mxu0 %v6460_v1  ;;  %v2529_v36 = vand.u32 4294901760, %v2528_v4 }
 0x14e   :  { %4573 = vmatpush3.bf16.msra.mxu1 %v5924_v63 }
 0x14f   :  { %4574 = vmatprep.subr.bf16.mxu1 %v6460_v1 }
 0x150   :  { %4510 = vmatpush3.bf16.msra.mxu0 %v5887_v13 }
 0x151   :  { %4511 = vmatprep.subr.bf16.mxu0 %v6460_v1 }
 0x152   :  { %4576 = vmatpush3.bf16.msra.mxu1 %v5967_v26 }
 0x153   :  { %4577 = vmatprep.subr.bf16.mxu1 %v6460_v1 }
 0x154   :  { %4513 = vmatpush3.bf16.msra.mxu0 %v5933_v18 }
 0x155   :  { %4514 = vmatprep.subr.bf16.mxu0 %v6460_v1 }
 0x156   :  { %4579 = vmatpush3.bf16.msra.mxu1 %v6008_v12 }
 0x157   :  { %4580 = vmatprep.subr.bf16.mxu1 %v6460_v1 }
 0x158   :  { %4516 = vmatpush3.bf16.msra.mxu0 %v5976_v24 }
 0x159   :  { %4517 = vmatprep.subr.bf16.mxu0 %v6460_v1 }
 0x15a   :  { %4582 = vmatpush3.bf16.msra.mxu1 %v6059_v41 }
 0x15b   :  { %4583 = vmatprep.subr.bf16.mxu1 %v6460_v1 }
 0x15c   :  { %4519 = vmatpush3.bf16.msra.mxu0 %v6499_v28 }
 0x15d   :  { %4520 = vmatprep.subr.bf16.mxu0 %v6460_v1 }
 0x15e   :  { %4585 = vmatpush3.bf16.msra.mxu1 %v6260_v30 }
 0x15f   :  { %4586 = vmatprep.subr.bf16.mxu1 %v6460_v1 }
 0x160   :  { %4522 = vmatpush3.bf16.msra.mxu0 %v6086_v39 }
 0x161   :  { %4030 = vmatmul.mubr.f32.vlgmr.msra.gmra.mrb[2].mxu1 %v2529_v36  ;;  %4523 = vmatprep.subr.bf16.mxu0 %v6460_v1 }
 0x162   :  { %4588 = vmatpush3.bf16.msra.mxu1 %v6500_v25  ;;  %4060 = vmatprep.mubr.msk.f32.mxu1 %vm4770_vm2, %v6466_v19 }
 0x163   :  { %4589 = vmatprep.subr.bf16.mxu1 %v6460_v1  ;;  %3937 = vmatmul.mubr.f32.vlgmr.msra.gmra.mrb[2].mxu0 %v6501_v3 }
 0x164   :  { %4525 = vmatpush3.bf16.msra.mxu0 %v6502_v23  ;;  %3967 = vmatprep.mubr.msk.f32.mxu0 %vm4770_vm2, %v6466_v19 }
 0x165   :  { %4526 = vmatprep.subr.bf16.mxu0 %v6460_v1 }
 0x166   :  { %4591 = vmatpush3.bf16.msra.mxu1 %v6503_v7 }
 0x167   :  { %4592 = vmatprep.subr.bf16.mxu1 %v6460_v1 }
 0x168   :  { %4528 = vmatpush3.bf16.msra.mxu0 %v6504_v46 }
 0x169   :  { %4529 = vmatprep.subr.bf16.mxu0 %v6460_v1 }
 0x16a   :  { %4594 = vmatpush3.bf16.msra.mxu1 %v6505_v27 }
 0x16b   :  { %4595 = vmatprep.subr.bf16.mxu1 %v6460_v1 }
 0x16c   :  { %4531 = vmatpush3.bf16.msra.mxu0 %v6506_v47 }
 0x16d   :  { %4532 = vmatprep.subr.bf16.mxu0 %v6460_v1 }
 0x16e   :  { %4597 = vmatpush3.bf16.msra.mxu1 %v6507_v29 }
 0x16f   :  { %4598 = vmatprep.subr.bf16.mxu1 %v6460_v1 }
 0x170   :  { %4534 = vmatpush3.bf16.msra.mxu0 %v6510_v34 }
 0x171   :  { %4535 = vmatprep.subr.bf16.mxu0 %v6460_v1 }
 0x172   :  { %4600 = vmatpush3.bf16.msra.mxu1 %v6511_v49 }
 0x173   :  { %4601 = vmatprep.subr.bf16.mxu1 %v6460_v1 }
 0x174   :  { %4537 = vmatpush3.bf16.msra.mxu0 %v6512_v44 }
 0x175   :  { %4538 = vmatprep.subr.bf16.mxu0 %v6460_v1 }
 0x176   :  { %4603 = vmatpush3.bf16.msra.mxu1 %v6513_v2 }
 0x177   :  { %4604 = vmatprep.subr.bf16.mxu1 %v6460_v1 }
 0x178   :  { %4540 = vmatpush3.bf16.msra.mxu0 %v6514_v55 }
 0x179   :  { %4541 = vmatprep.subr.bf16.mxu0 %v6460_v1 }
 0x17a   :  { %4606 = vmatpush3.bf16.msra.mxu1 %v4605_v56 }
 0x17b   :  { %4607 = vmatprep.subr.bf16.mxu1 %v6460_v1 }
 0x17c   :  { %4543 = vmatpush3.bf16.msra.mxu0 %v6515_v33 }
 0x17d   :  { %4061 = vmatmul.mubr.f32.vlgmr.msra.gmra.mrb[2].mxu1 %v6234_v16  ;;  %4544 = vmatprep.subr.bf16.mxu0 %v6460_v1 }
 0x17e   :  { %4609 = vmatpush3.bf16.msra.mxu1 %v6518_v43  ;;  %4091 = vmatprep.mubr.msk.f32.mxu1 %vm4770_vm2, %v6466_v19 }
 0x17f   :  { %4610 = vmatprep.subr.bf16.mxu1 %v6460_v1  ;;  %3968 = vmatmul.mubr.f32.vlgmr.msra.gmra.mrb[2].mxu0 %v6041_v9 }
 0x180   :  { %4546 = vmatpush3.bf16.msra.mxu0 %v5779_v40  ;;  %3998 = vmatprep.mubr.msk.f32.mxu0 %vm4770_vm2, %v6466_v19 }
 0x181   :  { %4547 = vmatprep.subr.bf16.mxu0 %v6460_v1 }
 0x182   :  { %4612 = vmatpush3.bf16.msra.mxu1 %v6521_v17 }
 0x183   :  { %4613 = vmatprep.subr.bf16.mxu1 %v6460_v1 }
 0x184   :  { %4549 = vmatpush3.bf16.msra.mxu0 %v5839_v32  ;;  %v6528_v32 = vld [vmem:[#allocation27_spill] sm:$0xff] }
 0x185   :  { %4550 = vmatprep.subr.bf16.mxu0 %v6460_v1  ;;  %v646_v40 = vpop.f32.mrb[0].mxu0  ;;  %v6530_v0 = vpack.c.bf16 %v6528_v32, %v6529_v35 }
 0x186   :  { %4615 = vmatpush3.bf16.msra.mxu1 %v6524_v50  ;;  %651 = vst.msk [vmem:[#allocation2] sm:$0xff] %vm650_vm12, %v646_v40  ;;  %v3628_v51 = vpop.f32.mrb[1].mxu0 }
 0x187   :  { %4616 = vmatprep.subr.bf16.mxu1 %v6460_v1 }
 0x188   :  { %4552 = vmatpush3.bf16.msra.mxu0 %v5887_v13  ;;  %v6531_v13 = vld [vmem:[#allocation33_spill] sm:$0xff] }
 0x189   :  { %4553 = vmatprep.subr.bf16.mxu0 %v6460_v1  ;;  %v6533_v4 = vpack.c.bf16 %v6531_v13, %v6532_v62 }
 0x18a   :  { %4618 = vmatpush3.bf16.msra.mxu1 %v6527_v60 }
 0x18b   :  { %4619 = vmatprep.subr.bf16.mxu1 %v6460_v1 }
 0x18c   :  { %4555 = vmatpush3.bf16.msra.mxu0 %v5933_v18  ;;  %v4626_v18 = vpack.c.bf16 %v6111_v59, %v6128_v20  ;;  %v6537_v59 = vld [vmem:[#allocation23_spill] sm:$0xff]  ;;  %v6538_v20 = vld [vmem:[#allocation28_spill] sm:$0xff] }
 0x18d   :  { %4556 = vmatprep.subr.bf16.mxu0 %v6460_v1 }
 0x18e   :  { %4621 = vmatpush3.bf16.msra.mxu1 %v6530_v0 }
 0x18f   :  { %4622 = vmatprep.subr.bf16.mxu1 %v6460_v1 }
 0x190   :  { %4558 = vmatpush3.bf16.msra.mxu0 %v5976_v24  ;;  %v6534_v24 = vld [vmem:[#allocation8_spill] sm:$0xff] }
 0x191   :  { %4559 = vmatprep.subr.bf16.mxu0 %v6460_v1 }
 0x192   :  { %4624 = vmatpush3.bf16.msra.mxu1 %v6533_v4 }
 0x193   :  { %4625 = vmatprep.subr.bf16.mxu1 %v6460_v1 }
 0x194   :  { %4561 = vmatpush3.bf16.msra.mxu0 %v6499_v28 }
 0x195   :  { %4562 = vmatprep.subr.bf16.mxu0 %v6460_v1 }
 0x196   :  { %4627 = vmatpush3.bf16.msra.mxu1 %v4626_v18 }
 0x197   :  { %4628 = vmatprep.subr.bf16.mxu1 %v6460_v1 }
 0x198   :  { %4564 = vmatpush3.bf16.msra.mxu0 %v6086_v39  ;;  %v6536_v39 = vld [vmem:[#allocation18_spill] sm:$0xff] }
 0x199   :  { %4092 = vmatmul.mubr.f32.vlgmr.msra.gmra.mrb[2].mxu1 %v6241_v42  ;;  %v6539_v42 = vld [vmem:[#allocation34_spill] sm:$0xff] }
 0x19a   :  { %4630 = vmatpush3.bf16.msra.mxu1 %v5824_v58  ;;  %4122 = vmatprep.mubr.msk.f32.mxu1 %vm4770_vm2, %v6466_v19 }
 0x19b   :  { %4631 = vmatprep.subr.bf16.mxu1 %v6460_v1  ;;  %3999 = vmatmul.mubr.f32.vlgmr.msra.gmra.mrb[2].mxu0 %v6041_v9  ;;  %v6535_v9 = vld [vmem:[#allocation13_spill] sm:$0xff] }
 0x19e   :  { %4633 = vmatpush3.bf16.msra.mxu1 %v5878_v11 }
 0x19f   :  { %4634 = vmatprep.subr.bf16.mxu1 %v6460_v1 }
 0x1a2   :  { %4636 = vmatpush3.bf16.msra.mxu1 %v5924_v63 }
 0x1a3   :  { %4637 = vmatprep.subr.bf16.mxu1 %v6460_v1 }
 0x1a6   :  { %4639 = vmatpush3.bf16.msra.mxu1 %v5967_v26 }
 0x1a7   :  { %4640 = vmatprep.subr.bf16.mxu1 %v6460_v1 }
 0x1aa   :  { %4642 = vmatpush3.bf16.msra.mxu1 %v6008_v12 }
 0x1ab   :  { %4643 = vmatprep.subr.bf16.mxu1 %v6460_v1 }
 0x1ae   :  { %4645 = vmatpush3.bf16.msra.mxu1 %v6059_v41 }
 0x1af   :  { %4646 = vmatprep.subr.bf16.mxu1 %v6460_v1 }
 0x1b2   :  { %4648 = vmatpush3.bf16.msra.mxu1 %v6260_v30 }
 0x1b3   :  { %4649 = vmatprep.subr.bf16.mxu1 %v6460_v1 }
 0x1b5   :  { %4123 = vmatmul.mubr.f32.vlgmr.msra.gmra.mrb[2].mxu1 %v2527_v57 }
 0x1b6   :  { %4651 = vmatpush3.bf16.msra.mxu1 %v6534_v24  ;;  %4153 = vmatprep.mubr.msk.f32.mxu1 %vm4770_vm2, %v6466_v19 }
 0x1b7   :  { %4652 = vmatprep.subr.bf16.mxu1 %v6460_v1 }
 0x1ba   :  { %4654 = vmatpush3.bf16.msra.mxu1 %v6535_v9 }
 0x1bb   :  { %4655 = vmatprep.subr.bf16.mxu1 %v6460_v1 }
 0x1be   :  { %4657 = vmatpush3.bf16.msra.mxu1 %v6536_v39 }
 0x1bf   :  { %4658 = vmatprep.subr.bf16.mxu1 %v6460_v1 }
 0x1c2   :  { %4660 = vmatpush3.bf16.msra.mxu1 %v6537_v59 }
 0x1c3   :  { %4661 = vmatprep.subr.bf16.mxu1 %v6460_v1 }
 0x1c6   :  { %4663 = vmatpush3.bf16.msra.mxu1 %v6538_v20 }
 0x1c7   :  { %4664 = vmatprep.subr.bf16.mxu1 %v6460_v1 }
 0x1ca   :  { %4666 = vmatpush3.bf16.msra.mxu1 %v6539_v42 }
 0x1cb   :  { %4667 = vmatprep.subr.bf16.mxu1 %v6460_v1 }
 0x1ce   :  { %4669 = vmatpush3.bf16.msra.mxu1 %v6146_v5 }
 0x1cf   :  { %4670 = vmatprep.subr.bf16.mxu1 %v6460_v1 }
 0x1d1   :  { %4154 = vmatmul.mubr.f32.vlgmr.msra.gmra.mrb[2].mxu1 %v6234_v16 }
 0x1d2   :  { %4672 = vmatpush3.bf16.msra.mxu1 %v5824_v58  ;;  %4184 = vmatprep.mubr.msk.f32.mxu1 %vm4770_vm2, %v6466_v19 }
 0x1d3   :  { %4673 = vmatprep.subr.bf16.mxu1 %v6460_v1 }
 0x1d6   :  { %4675 = vmatpush3.bf16.msra.mxu1 %v5878_v11 }
 0x1d7   :  { %4676 = vmatprep.subr.bf16.mxu1 %v6460_v1 }
 0x1da   :  { %4678 = vmatpush3.bf16.msra.mxu1 %v5924_v63 }
 0x1db   :  { %4679 = vmatprep.subr.bf16.mxu1 %v6460_v1 }
 0x1de   :  { %4681 = vmatpush3.bf16.msra.mxu1 %v5967_v26 }
 0x1df   :  { %4682 = vmatprep.subr.bf16.mxu1 %v6460_v1 }
 0x1e2   :  { %4684 = vmatpush3.bf16.msra.mxu1 %v6008_v12 }
 0x1e3   :  { %4685 = vmatprep.subr.bf16.mxu1 %v6460_v1 }
 0x1e6   :  { %4687 = vmatpush3.bf16.msra.mxu1 %v6059_v41 }
 0x1e7   :  { %4688 = vmatprep.subr.bf16.mxu1 %v6460_v1 }
 0x1ea   :  { %4690 = vmatpush3.bf16.msra.mxu1 %v6260_v30 }
 0x1ed   :  { %4185 = vmatmul.mubr.f32.vlgmr.msra.gmra.mrb[2].mxu1 %v6234_v16 }
 0x218   :  { %v1482_v58 = vpop.f32.mrb[0].mxu1 }
 0x219   :  { %v3814_v11 = vpop.f32.mrb[1].mxu1  ;;  %1487 = vrot.lane.b32.xlu0 %v1482_v58, %s4777_s1 }
 0x26e   :  { %v2220_v19 = vpop.f32.mrb[2].mxu0 }
 0x26f   :  { %2225 = vrot.lane.b32.xlu1 %v2220_v19, %s4778_s11  ;;  %v4000_v63 = vpop.f32.mrb[3].mxu0 }
 0x28b   :  { %v1488_v26 = vpop.permute.xlu0 %1487 }
 0x28c   :  { %1491 = vst.msk [vmem:[#allocation2] sm:$0xff] %vm1490_vm13, %v1488_v26 }
 0x28d   :  { %1493 = vst.msk [vmem:[#allocation2 + $0x8] sm:$0xff] %vm1492_vm14, %v1488_v26 }
 0x2c0   :  { %v3057_v12 = vpop.f32.mrb[2].mxu1 }
 0x2c1   :  { %3062 = vrot.lane.b32.xlu0 %v3057_v12, %s4779_s16  ;;  %v4186_v1 = vpop.f32.mrb[3].mxu1 }
 0x2e1   :  { %v2226_v41 = vpop.permute.xlu1 %2225 }
 0x2e2   :  { %2229 = vst.msk [vmem:[#allocation2 + $0x8] sm:$0xff] %vm2228_vm15, %v2226_v41 }
 0x333   :  { %v3063_v5 = vpop.permute.xlu0 %3062 }
 0x334   :  { %3066 = vst.msk [vmem:[#allocation2 + $0x8] sm:$0xff] %vm3065_vm0, %v3063_v5 }
 0x335   :  { %3068 = vst.msk [vmem:[#allocation2 + $0x10] sm:$0xff] %vm3067_vm1, %v3063_v5 }
 0x336   :  { %4755 = shalt.err (!%p4752_p4)
}
 0x337   :  { %s4756_s17 = scalar_lea.hbm %s6420_s2, 384 }
 0x338   :  { %p4757_p5 = scmp.ne.s32.totalorder %s6420_s2, %s4756_s17  ;;  %p4760_p6 = scmp.lt.u32.totalorder %s4756_s17, %s6420_s2 }
 0x33a   :  { %p4762_p7 = pnand %p4760_p6, %p4757_p5 }
 0x33c   :  { %4765 = shalt.err (!%p4762_p7)
}
 0x33d   :  { %3078 = dma.vmem_to_hbm [thread:$0]  %s3076_s12, 384, %s6420_s2, [#allocation3]  }
 0x33e   :  { %4766 = dma.done.wait [#allocation3], 384  }
 0x33f   :  { %4767 = vsyncadd [#allocation3], 4294966912 }
 0x340   :  { %3082 = vsyncpa [#allocation3], 1 }

</bundles_post_ra>
